<compile_context>
chip_gen: v7x
topology: tpu7x:2x2x1
jax: 0.10.0
libtpu: 0.0.40
codegen_flags: <defaults>
</compile_context>

<pallas_src>
import jax
import jax.numpy as jnp
from jax import lax
from jax.experimental import pallas as pl
from jax.experimental.pallas import tpu as pltpu

_SUBLANE = 8
_LANE = 128


def _round_up(x, m):
    return ((x + m - 1) // m) * m


# ------------------------------------------------------------------ weight repacking
def _split_gates(w, H):
    """PyTorch gate order [i, f, g, o] -> (i, f, o, g) chunks along the last axis."""
    return w[..., 0:H], w[..., H:2 * H], w[..., 3 * H:4 * H], w[..., 2 * H:3 * H]


def _reorder_gates(w, H):
    """Reorder gate columns [i, f, g, o] -> [i, f, o, g]."""
    return jnp.concatenate(_split_gates(w, H), axis=-1)


def _interleave_dirs(w_f, w_b, H):
    """Fused column layout [i_f,i_b, f_f,f_b, o_f,o_b, g_f,g_b] (each block H wide)."""
    fi, ff, fo, fg = _split_gates(w_f, H)
    bi, bf, bo, bg = _split_gates(w_b, H)
    return jnp.concatenate([fi, bi, ff, bf, fo, bo, fg, bg], axis=-1)


def _blockdiag_whh(whh_f, whh_b, H):
    """(2H, 8H) block-diagonal recurrent weight: rows 0:H <- h_fwd, rows H:2H <- h_bwd."""
    z = jnp.zeros((H, H), whh_f.dtype)
    fi, ff, fo, fg = _split_gates(whh_f, H)
    bi, bf, bo, bg = _split_gates(whh_b, H)
    top = jnp.concatenate([fi, z, ff, z, fo, z, fg, z], axis=-1)
    bot = jnp.concatenate([z, bi, z, bf, z, bo, z, bg], axis=-1)
    return jnp.concatenate([top, bot], axis=0)


# ------------------------------------------------------------------ fused kernel
def _make_fused_textrnn_kernel(T, Bp, H, L, Vpad):
    """Fused TextRNN forward for static shapes.

    Ref order: ids(T*Bp,1 i32), emb(Vpad,D),
               per fused layer l<L-1: wihA, bA, wihB, bB, whh_blockdiag,
               last layer: wih_f, whh_f, b_f, wih_b, b_b,
               fc_w(2H,Opad), fc_b(1,Opad), logits(Bp,Opad).
    """
    TB = T * Bp

    def cell(g, c_prev, W):
        # g: (Bp, 4W) with gate column order [i | f | o | g], each W lanes wide.
        sio = jax.nn.sigmoid(g[:, 0:3 * W])      # one full-tile EUP pass covers i, f, o
        gg = jnp.tanh(g[:, 3 * W:4 * W])         # one EUP pass for the cell gate
        i = sio[:, 0:W]
        f = sio[:, W:2 * W]
        o = sio[:, 2 * W:3 * W]
        c_new = f * c_prev + i * gg
        h_new = o * jnp.tanh(c_new)
        return h_new, c_new

    def kernel(*refs):
        it = iter(refs)
        ids_ref = next(it)
        emb_ref = next(it)
        fused = [tuple(next(it) for _ in range(5)) for _ in range(L - 1)]
        wih_f_ref = next(it)
        whh_f_ref = next(it)
        b_f_ref = next(it)
        wih_b_ref = next(it)
        b_b_ref = next(it)
        fcw_ref = next(it)
        fcb_ref = next(it)
        logits_ref = next(it)

        # ---- embedding gather fused on-chip: one-hot @ table on the MXU ----------
        ids = ids_ref[...]                                              # (T*Bp, 1) int32
        vocab_lane = lax.broadcasted_iota(jnp.int32, (TB, Vpad), 1)
        onehot = (vocab_lane == ids).astype(jnp.float32)
        seq = jnp.dot(onehot, emb_ref[...],
                      preferred_element_type=jnp.float32)               # (T*Bp, D) time-major

        # ---- fused bidirectional layers 0 .. L-2 ---------------------------------
        for (wihA_ref, bA_ref, wihB_ref, bB_ref, whh_ref) in fused:
            # Hoisted input projection for all T steps (off the serial path).
            # ginA carries the fwd gate columns, ginB the bwd gate columns
            # (complementary column sets), so per-step assembly is a plain add.
            ginA = (jnp.dot(seq, wihA_ref[...], preferred_element_type=jnp.float32)
                    + bA_ref[...])                                       # (T*Bp, 8H)
            ginB = (jnp.dot(seq, wihB_ref[...], preferred_element_type=jnp.float32)
                    + bB_ref[...])                                       # (T*Bp, 8H)

            h = jnp.zeros((Bp, 2 * H), jnp.float32)                      # [h_fwd | h_bwd]
            c = jnp.zeros((Bp, 2 * H), jnp.float32)
            h_steps = []
            for s in range(T):                                           # fully unrolled
                g = (ginA[s * Bp:(s + 1) * Bp]                           # fwd gates, t = s
                     + ginB[(T - 1 - s) * Bp:(T - s) * Bp]               # bwd gates, t = T-1-s
                     + jnp.dot(h, whh_ref[...],
                               preferred_element_type=jnp.float32))      # one (Bp,2H)@(2H,8H)
                h, c = cell(g, c, 2 * H)
                h_steps.append(h)

            # Next layer's time-major input: row block t = [h_fwd(t) | h_bwd(t)].
            left = lax.broadcasted_iota(jnp.int32, (Bp, 2 * H), 1) < H
            seq = jnp.concatenate(
                [jnp.where(left, h_steps[t], h_steps[T - 1 - t]) for t in range(T)],
                axis=0)                                                  # (T*Bp, 2H)

        # ---- last layer ----------------------------------------------------------
        # Forward direction: full recurrence, only the final hidden state is needed.
        gin_f = (jnp.dot(seq, wih_f_ref[...], preferred_element_type=jnp.float32)
                 + b_f_ref[...])                                         # (T*Bp, 4H)
        h = jnp.zeros((Bp, H), jnp.float32)
        c = jnp.zeros((Bp, H), jnp.float32)
        for s in range(T):
            g = (gin_f[s * Bp:(s + 1) * Bp]
                 + jnp.dot(h, whh_f_ref[...], preferred_element_type=jnp.float32))
            h, c = cell(g, c, H)
        h_f_last = h

        # Backward direction: out[:, -1] needs exactly ONE cell step from the zero
        # state (valid only because h0 = c0 = 0, as in the PyTorch module).
        x_last = seq[(T - 1) * Bp:T * Bp]
        g_b = (jnp.dot(x_last, wih_b_ref[...], preferred_element_type=jnp.float32)
               + b_b_ref[...])
        h_b_last, _ = cell(g_b, jnp.zeros((Bp, H), jnp.float32), H)

        # ---- dropout is identity in eval mode; FC head with split weights --------
        # TODO(synk): training-mode dropout (pltpu.prng_random_bits mask) not implemented.
        fcw = fcw_ref[...]
        logits_ref[...] = (
            jnp.dot(h_f_last, fcw[0:H, :], preferred_element_type=jnp.float32)
            + jnp.dot(h_b_last, fcw[H:2 * H, :], preferred_element_type=jnp.float32)
            + fcb_ref[...])

    return kernel


# ------------------------------------------------------------------ model forward
@jax.jit
def textrnn_forward(params, token_ids):
    B, T = token_ids.shape
    emb = params["embedding"].astype(jnp.float32)
    V, D = emb.shape
    H = params["lstm"][0]["fwd"]["w_hh"].shape[0]
    L = len(params["lstm"])
    label_num = params["fc_w"].shape[1]

    Bp = _round_up(max(B, _SUBLANE), _SUBLANE)        # pad batch to full sublanes
    Opad = _round_up(max(label_num, _LANE), _LANE)    # pad FC output to full lanes
    Vpad = _round_up(max(V, _LANE), _LANE)            # pad vocab for the one-hot gather

    # Token ids, time-major and batch-padded; the embedding gather runs inside the kernel.
    ids = jnp.pad(token_ids.astype(jnp.int32).T, ((0, 0), (0, Bp - B)))
    ids = ids.reshape(T * Bp, 1)
    # TODO(synk): for large vocabularies keep the table in HBM (pl.ANY) + DMA gather
    #             instead of holding the whole padded table in VMEM.
    emb_pad = jnp.pad(emb, ((0, Vpad - V), (0, 0)))

    flat_w = []
    for l in range(L - 1):                            # fused bidirectional layers
        fwd, bwd = params["lstm"][l]["fwd"], params["lstm"][l]["bwd"]
        zw = jnp.zeros_like(fwd["w_ih"])
        zb = jnp.zeros_like(fwd["b"])
        flat_w += [
            _interleave_dirs(fwd["w_ih"], zw, H),         # wihA: fwd gate columns only
            _interleave_dirs(fwd["b"], zb, H),            # bA
            _interleave_dirs(zw, bwd["w_ih"], H),         # wihB: bwd gate columns only
            _interleave_dirs(zb, bwd["b"], H),            # bB
            _blockdiag_whh(fwd["w_hh"], bwd["w_hh"], H),  # (2H, 8H) block-diagonal
        ]
    last = params["lstm"][L - 1]
    flat_w += [
        _reorder_gates(last["fwd"]["w_ih"], H),
        _reorder_gates(last["fwd"]["w_hh"], H),
        _reorder_gates(last["fwd"]["b"], H),
        _reorder_gates(last["bwd"]["w_ih"], H),           # bwd w_hh unused: 1 step from zero state
        _reorder_gates(last["bwd"]["b"], H),
    ]

    fc_w_pad = jnp.pad(params["fc_w"].astype(jnp.float32), ((0, 0), (0, Opad - label_num)))
    fc_b_pad = jnp.pad(params["fc_b"].astype(jnp.float32), (0, Opad - label_num)).reshape(1, Opad)

    kernel = _make_fused_textrnn_kernel(T, Bp, H, L, Vpad)

    logits_pad = pl.pallas_call(
        kernel,
        out_shape=jax.ShapeDtypeStruct((Bp, Opad), jnp.float32),
        compiler_params=pltpu.CompilerParams(vmem_limit_bytes=32 * 1024 * 1024),
    )(ids, emb_pad, *flat_w, fc_w_pad, fc_b_pad)

    return logits_pad[:B, :label_num]


# ------------------------------------------------------------------ pure-JAX reference
def _ref_lstm_direction(x_tbd, w_ih, w_hh, bias):
    T, B, D = x_tbd.shape
    H = w_hh.shape[0]

    def step(carry, x_t):
        h, c = carry
        gates = x_t @ w_ih + h @ w_hh + bias
        i = jax.nn.sigmoid(gates[:, :H])
        f = jax.nn.sigmoid(gates[:, H:2 * H])
        g = jnp.tanh(gates[:, 2 * H:3 * H])
        o = jax.nn.sigmoid(gates[:, 3 * H:])
        c = f * c + i * g
        h = o * jnp.tanh(c)
        return (h, c), h

    (_, _), hs = jax.lax.scan(step, (jnp.zeros((B, H)), jnp.zeros((B, H))), x_tbd)
    return hs


def _ref_forward(params, token_ids):
    emb = jnp.take(params["embedding"], token_ids, axis=0)
    x = jnp.transpose(emb, (1, 0, 2)).astype(jnp.float32)
    for layer in params["lstm"]:
        h_f = _ref_lstm_direction(x, layer["fwd"]["w_ih"], layer["fwd"]["w_hh"], layer["fwd"]["b"])
        h_b = _ref_lstm_direction(x[::-1], layer["bwd"]["w_ih"], layer["bwd"]["w_hh"],
                                  layer["bwd"]["b"])[::-1]
        x = jnp.concatenate([h_f, h_b], axis=-1)
    return x[-1] @ params["fc_w"] + params["fc_b"]


# ------------------------------------------------------------------ param init
def init_params(key, vocab_size, embedding_dim, hidden_size, layer_num, label_num=2):
    keys = jax.random.split(key, 4 + layer_num * 12)
    kit = iter(keys)
    k = 1.0 / jnp.sqrt(hidden_size)

    params = {
        "embedding": jax.random.normal(next(kit), (vocab_size, embedding_dim), jnp.float32),
        "lstm": [],
        "fc_w": jax.random.uniform(next(kit), (2 * hidden_size, label_num), jnp.float32, -k, k),
        "fc_b": jax.random.uniform(next(kit), (label_num,), jnp.float32, -k, k),
    }
    in_dim = embedding_dim
    for _ in range(layer_num):
        layer = {}
        for d in ("fwd", "bwd"):
            w_ih = jax.random.uniform(next(kit), (in_dim, 4 * hidden_size), jnp.float32, -k, k)
            w_hh = jax.random.uniform(next(kit), (hidden_size, 4 * hidden_size), jnp.float32, -k, k)
            b_ih = jax.random.uniform(next(kit), (4 * hidden_size,), jnp.float32, -k, k)
            b_hh = jax.random.uniform(next(kit), (4 * hidden_size,), jnp.float32, -k, k)
            layer[d] = {"w_ih": w_ih, "w_hh": w_hh, "b": (b_ih + b_hh).reshape(1, -1)}
        params["lstm"].append(layer)
        in_dim = 2 * hidden_size
    return params


# ------------------------------------------------------------------ main
if __name__ == "__main__":
    B, T = 2, 8
    vocab_size, embedding_dim, hidden_size, layer_num = 50, 32, 32, 2

    key = jax.random.PRNGKey(0)
    k_param, k_tok = jax.random.split(key)
    params = init_params(k_param, vocab_size, embedding_dim, hidden_size, layer_num)
    token_ids = jax.random.randint(k_tok, (B, T), 0, vocab_size, dtype=jnp.int32)

    logits = jax.block_until_ready(textrnn_forward(params, token_ids))
    ref = jax.block_until_ready(_ref_forward(params, token_ids))

    assert logits.shape == (B, 2)
    assert jnp.allclose(logits, ref, rtol=1e-4, atol=1e-4), (logits, ref)

    print("KERNEL_OK")
</pallas_src>

<mosaic_0001>
module attributes {stable_mosaic.version = 11 : i64} {
  func.func @kernel(%arg0: memref<64x1xi32, #tpu.memory_space<vmem>>, %arg1: memref<128x32xf32, #tpu.memory_space<vmem>>, %arg2: memref<32x256xf32, #tpu.memory_space<vmem>>, %arg3: memref<1x256xf32, #tpu.memory_space<vmem>>, %arg4: memref<32x256xf32, #tpu.memory_space<vmem>>, %arg5: memref<1x256xf32, #tpu.memory_space<vmem>>, %arg6: memref<64x256xf32, #tpu.memory_space<vmem>>, %arg7: memref<64x128xf32, #tpu.memory_space<vmem>>, %arg8: memref<32x128xf32, #tpu.memory_space<vmem>>, %arg9: memref<1x128xf32, #tpu.memory_space<vmem>>, %arg10: memref<64x128xf32, #tpu.memory_space<vmem>>, %arg11: memref<1x128xf32, #tpu.memory_space<vmem>>, %arg12: memref<64x128xf32, #tpu.memory_space<vmem>>, %arg13: memref<1x128xf32, #tpu.memory_space<vmem>>, %arg14: memref<8x128xf32, #tpu.memory_space<vmem>>) attributes {dimension_semantics = [], scalar_prefetch = 0 : i64, scratch_operands = 0 : i64, tpu.core_type = #tpu.core_type<tc>} {
    %c0 = arith.constant 0 : index
    %c0_0 = arith.constant 0 : index
    %0 = vector.load %arg0[%c0, %c0_0] : memref<64x1xi32, #tpu.memory_space<vmem>>, vector<64x1xi32>
    %1 = tpu.iota {dimensions = array<i32: 1>} : vector<64x128xi32>
    %2 = vector.broadcast %0 : vector<64x1xi32> to vector<64x128xi32>
    %3 = arith.cmpi eq, %1, %2 : vector<64x128xi32>
    %4 = arith.extui %3 : vector<64x128xi1> to vector<64x128xi32>
    %5 = arith.sitofp %4 : vector<64x128xi32> to vector<64x128xf32>
    %c0_1 = arith.constant 0 : index
    %c0_2 = arith.constant 0 : index
    %6 = vector.load %arg1[%c0_1, %c0_2] : memref<128x32xf32, #tpu.memory_space<vmem>>, vector<128x32xf32>
    %cst = arith.constant dense<0.000000e+00> : vector<64x32xf32>
    %7 = tpu.matmul %5, %6, %cst {dimension_numbers = #tpu.dot_dimension_numbers<[1], [0], [0], [1], [0, 0, 1, 1], [], []>} : vector<64x128xf32>, vector<128x32xf32>, vector<64x32xf32> -> vector<64x32xf32>
    %c0_3 = arith.constant 0 : index
    %c0_4 = arith.constant 0 : index
    %8 = vector.load %arg2[%c0_3, %c0_4] : memref<32x256xf32, #tpu.memory_space<vmem>>, vector<32x256xf32>
    %cst_5 = arith.constant dense<0.000000e+00> : vector<64x256xf32>
    %9 = tpu.matmul %7, %8, %cst_5 {dimension_numbers = #tpu.dot_dimension_numbers<[1], [0], [0], [1], [0, 0, 1, 1], [], []>} : vector<64x32xf32>, vector<32x256xf32>, vector<64x256xf32> -> vector<64x256xf32>
    %c0_6 = arith.constant 0 : index
    %c0_7 = arith.constant 0 : index
    %10 = vector.load %arg3[%c0_6, %c0_7] : memref<1x256xf32, #tpu.memory_space<vmem>>, vector<1x256xf32>
    %11 = vector.broadcast %10 : vector<1x256xf32> to vector<64x256xf32>
    %12 = arith.addf %9, %11 : vector<64x256xf32>
    %c0_8 = arith.constant 0 : index
    %c0_9 = arith.constant 0 : index
    %13 = vector.load %arg4[%c0_8, %c0_9] : memref<32x256xf32, #tpu.memory_space<vmem>>, vector<32x256xf32>
    %cst_10 = arith.constant dense<0.000000e+00> : vector<64x256xf32>
    %14 = tpu.matmul %7, %13, %cst_10 {dimension_numbers = #tpu.dot_dimension_numbers<[1], [0], [0], [1], [0, 0, 1, 1], [], []>} : vector<64x32xf32>, vector<32x256xf32>, vector<64x256xf32> -> vector<64x256xf32>
    %c0_11 = arith.constant 0 : index
    %c0_12 = arith.constant 0 : index
    %15 = vector.load %arg5[%c0_11, %c0_12] : memref<1x256xf32, #tpu.memory_space<vmem>>, vector<1x256xf32>
    %16 = vector.broadcast %15 : vector<1x256xf32> to vector<64x256xf32>
    %17 = arith.addf %14, %16 : vector<64x256xf32>
    %cst_13 = arith.constant 0.000000e+00 : f32
    %18 = vector.broadcast %cst_13 : f32 to vector<8x64xf32>
    %cst_14 = arith.constant 0.000000e+00 : f32
    %19 = vector.broadcast %cst_14 : f32 to vector<8x64xf32>
    %20 = vector.extract_strided_slice %12 {offsets = [0, 0], sizes = [8, 256], strides = [1, 1]} : vector<64x256xf32> to vector<8x256xf32>
    %21 = vector.extract_strided_slice %17 {offsets = [56, 0], sizes = [8, 256], strides = [1, 1]} : vector<64x256xf32> to vector<8x256xf32>
    %22 = arith.addf %20, %21 : vector<8x256xf32>
    %c0_15 = arith.constant 0 : index
    %c0_16 = arith.constant 0 : index
    %23 = vector.load %arg6[%c0_15, %c0_16] : memref<64x256xf32, #tpu.memory_space<vmem>>, vector<64x256xf32>
    %cst_17 = arith.constant dense<0.000000e+00> : vector<8x256xf32>
    %24 = tpu.matmul %18, %23, %cst_17 {dimension_numbers = #tpu.dot_dimension_numbers<[1], [0], [0], [1], [0, 0, 1, 1], [], []>} : vector<8x64xf32>, vector<64x256xf32>, vector<8x256xf32> -> vector<8x256xf32>
    %25 = arith.addf %22, %24 : vector<8x256xf32>
    %26 = vector.extract_strided_slice %25 {offsets = [0, 0], sizes = [8, 192], strides = [1, 1]} : vector<8x256xf32> to vector<8x192xf32>
    %27 = arith.negf %26 : vector<8x192xf32>
    %28 = math.exp %27 : vector<8x192xf32>
    %cst_18 = arith.constant 1.000000e+00 : f32
    %29 = vector.broadcast %cst_18 : f32 to vector<8x192xf32>
    %30 = arith.addf %29, %28 : vector<8x192xf32>
    %31 = arith.divf %29, %30 : vector<8x192xf32>
    %32 = vector.extract_strided_slice %25 {offsets = [0, 192], sizes = [8, 64], strides = [1, 1]} : vector<8x256xf32> to vector<8x64xf32>
    %33 = math.tanh %32 : vector<8x64xf32>
    %34 = vector.extract_strided_slice %31 {offsets = [0, 0], sizes = [8, 64], strides = [1, 1]} : vector<8x192xf32> to vector<8x64xf32>
    %35 = vector.extract_strided_slice %31 {offsets = [0, 64], sizes = [8, 64], strides = [1, 1]} : vector<8x192xf32> to vector<8x64xf32>
    %36 = vector.extract_strided_slice %31 {offsets = [0, 128], sizes = [8, 64], strides = [1, 1]} : vector<8x192xf32> to vector<8x64xf32>
    %37 = arith.mulf %35, %19 : vector<8x64xf32>
    %38 = arith.mulf %34, %33 : vector<8x64xf32>
    %39 = arith.addf %37, %38 : vector<8x64xf32>
    %40 = math.tanh %39 : vector<8x64xf32>
    %41 = arith.mulf %36, %40 : vector<8x64xf32>
    %42 = vector.extract_strided_slice %12 {offsets = [8, 0], sizes = [8, 256], strides = [1, 1]} : vector<64x256xf32> to vector<8x256xf32>
    %43 = vector.extract_strided_slice %17 {offsets = [48, 0], sizes = [8, 256], strides = [1, 1]} : vector<64x256xf32> to vector<8x256xf32>
    %44 = arith.addf %42, %43 : vector<8x256xf32>
    %c0_19 = arith.constant 0 : index
    %c0_20 = arith.constant 0 : index
    %45 = vector.load %arg6[%c0_19, %c0_20] : memref<64x256xf32, #tpu.memory_space<vmem>>, vector<64x256xf32>
    %cst_21 = arith.constant dense<0.000000e+00> : vector<8x256xf32>
    %46 = tpu.matmul %41, %45, %cst_21 {dimension_numbers = #tpu.dot_dimension_numbers<[1], [0], [0], [1], [0, 0, 1, 1], [], []>} : vector<8x64xf32>, vector<64x256xf32>, vector<8x256xf32> -> vector<8x256xf32>
    %47 = arith.addf %44, %46 : vector<8x256xf32>
    %48 = vector.extract_strided_slice %47 {offsets = [0, 0], sizes = [8, 192], strides = [1, 1]} : vector<8x256xf32> to vector<8x192xf32>
    %49 = arith.negf %48 : vector<8x192xf32>
    %50 = math.exp %49 : vector<8x192xf32>
    %cst_22 = arith.constant 1.000000e+00 : f32
    %51 = vector.broadcast %cst_22 : f32 to vector<8x192xf32>
    %52 = arith.addf %51, %50 : vector<8x192xf32>
    %53 = arith.divf %51, %52 : vector<8x192xf32>
    %54 = vector.extract_strided_slice %47 {offsets = [0, 192], sizes = [8, 64], strides = [1, 1]} : vector<8x256xf32> to vector<8x64xf32>
    %55 = math.tanh %54 : vector<8x64xf32>
    %56 = vector.extract_strided_slice %53 {offsets = [0, 0], sizes = [8, 64], strides = [1, 1]} : vector<8x192xf32> to vector<8x64xf32>
    %57 = vector.extract_strided_slice %53 {offsets = [0, 64], sizes = [8, 64], strides = [1, 1]} : vector<8x192xf32> to vector<8x64xf32>
    %58 = vector.extract_strided_slice %53 {offsets = [0, 128], sizes = [8, 64], strides = [1, 1]} : vector<8x192xf32> to vector<8x64xf32>
    %59 = arith.mulf %57, %39 : vector<8x64xf32>
    %60 = arith.mulf %56, %55 : vector<8x64xf32>
    %61 = arith.addf %59, %60 : vector<8x64xf32>
    %62 = math.tanh %61 : vector<8x64xf32>
    %63 = arith.mulf %58, %62 : vector<8x64xf32>
    %64 = vector.extract_strided_slice %12 {offsets = [16, 0], sizes = [8, 256], strides = [1, 1]} : vector<64x256xf32> to vector<8x256xf32>
    %65 = vector.extract_strided_slice %17 {offsets = [40, 0], sizes = [8, 256], strides = [1, 1]} : vector<64x256xf32> to vector<8x256xf32>
    %66 = arith.addf %64, %65 : vector<8x256xf32>
    %c0_23 = arith.constant 0 : index
    %c0_24 = arith.constant 0 : index
    %67 = vector.load %arg6[%c0_23, %c0_24] : memref<64x256xf32, #tpu.memory_space<vmem>>, vector<64x256xf32>
    %cst_25 = arith.constant dense<0.000000e+00> : vector<8x256xf32>
    %68 = tpu.matmul %63, %67, %cst_25 {dimension_numbers = #tpu.dot_dimension_numbers<[1], [0], [0], [1], [0, 0, 1, 1], [], []>} : vector<8x64xf32>, vector<64x256xf32>, vector<8x256xf32> -> vector<8x256xf32>
    %69 = arith.addf %66, %68 : vector<8x256xf32>
    %70 = vector.extract_strided_slice %69 {offsets = [0, 0], sizes = [8, 192], strides = [1, 1]} : vector<8x256xf32> to vector<8x192xf32>
    %71 = arith.negf %70 : vector<8x192xf32>
    %72 = math.exp %71 : vector<8x192xf32>
    %cst_26 = arith.constant 1.000000e+00 : f32
    %73 = vector.broadcast %cst_26 : f32 to vector<8x192xf32>
    %74 = arith.addf %73, %72 : vector<8x192xf32>
    %75 = arith.divf %73, %74 : vector<8x192xf32>
    %76 = vector.extract_strided_slice %69 {offsets = [0, 192], sizes = [8, 64], strides = [1, 1]} : vector<8x256xf32> to vector<8x64xf32>
    %77 = math.tanh %76 : vector<8x64xf32>
    %78 = vector.extract_strided_slice %75 {offsets = [0, 0], sizes = [8, 64], strides = [1, 1]} : vector<8x192xf32> to vector<8x64xf32>
    %79 = vector.extract_strided_slice %75 {offsets = [0, 64], sizes = [8, 64], strides = [1, 1]} : vector<8x192xf32> to vector<8x64xf32>
    %80 = vector.extract_strided_slice %75 {offsets = [0, 128], sizes = [8, 64], strides = [1, 1]} : vector<8x192xf32> to vector<8x64xf32>
    %81 = arith.mulf %79, %61 : vector<8x64xf32>
    %82 = arith.mulf %78, %77 : vector<8x64xf32>
    %83 = arith.addf %81, %82 : vector<8x64xf32>
    %84 = math.tanh %83 : vector<8x64xf32>
    %85 = arith.mulf %80, %84 : vector<8x64xf32>
    %86 = vector.extract_strided_slice %12 {offsets = [24, 0], sizes = [8, 256], strides = [1, 1]} : vector<64x256xf32> to vector<8x256xf32>
    %87 = vector.extract_strided_slice %17 {offsets = [32, 0], sizes = [8, 256], strides = [1, 1]} : vector<64x256xf32> to vector<8x256xf32>
    %88 = arith.addf %86, %87 : vector<8x256xf32>
    %c0_27 = arith.constant 0 : index
    %c0_28 = arith.constant 0 : index
    %89 = vector.load %arg6[%c0_27, %c0_28] : memref<64x256xf32, #tpu.memory_space<vmem>>, vector<64x256xf32>
    %cst_29 = arith.constant dense<0.000000e+00> : vector<8x256xf32>
    %90 = tpu.matmul %85, %89, %cst_29 {dimension_numbers = #tpu.dot_dimension_numbers<[1], [0], [0], [1], [0, 0, 1, 1], [], []>} : vector<8x64xf32>, vector<64x256xf32>, vector<8x256xf32> -> vector<8x256xf32>
    %91 = arith.addf %88, %90 : vector<8x256xf32>
    %92 = vector.extract_strided_slice %91 {offsets = [0, 0], sizes = [8, 192], strides = [1, 1]} : vector<8x256xf32> to vector<8x192xf32>
    %93 = arith.negf %92 : vector<8x192xf32>
    %94 = math.exp %93 : vector<8x192xf32>
    %cst_30 = arith.constant 1.000000e+00 : f32
    %95 = vector.broadcast %cst_30 : f32 to vector<8x192xf32>
    %96 = arith.addf %95, %94 : vector<8x192xf32>
    %97 = arith.divf %95, %96 : vector<8x192xf32>
    %98 = vector.extract_strided_slice %91 {offsets = [0, 192], sizes = [8, 64], strides = [1, 1]} : vector<8x256xf32> to vector<8x64xf32>
    %99 = math.tanh %98 : vector<8x64xf32>
    %100 = vector.extract_strided_slice %97 {offsets = [0, 0], sizes = [8, 64], strides = [1, 1]} : vector<8x192xf32> to vector<8x64xf32>
    %101 = vector.extract_strided_slice %97 {offsets = [0, 64], sizes = [8, 64], strides = [1, 1]} : vector<8x192xf32> to vector<8x64xf32>
    %102 = vector.extract_strided_slice %97 {offsets = [0, 128], sizes = [8, 64], strides = [1, 1]} : vector<8x192xf32> to vector<8x64xf32>
    %103 = arith.mulf %101, %83 : vector<8x64xf32>
    %104 = arith.mulf %100, %99 : vector<8x64xf32>
    %105 = arith.addf %103, %104 : vector<8x64xf32>
    %106 = math.tanh %105 : vector<8x64xf32>
    %107 = arith.mulf %102, %106 : vector<8x64xf32>
    %108 = vector.extract_strided_slice %12 {offsets = [32, 0], sizes = [8, 256], strides = [1, 1]} : vector<64x256xf32> to vector<8x256xf32>
    %109 = vector.extract_strided_slice %17 {offsets = [24, 0], sizes = [8, 256], strides = [1, 1]} : vector<64x256xf32> to vector<8x256xf32>
    %110 = arith.addf %108, %109 : vector<8x256xf32>
    %c0_31 = arith.constant 0 : index
    %c0_32 = arith.constant 0 : index
    %111 = vector.load %arg6[%c0_31, %c0_32] : memref<64x256xf32, #tpu.memory_space<vmem>>, vector<64x256xf32>
    %cst_33 = arith.constant dense<0.000000e+00> : vector<8x256xf32>
    %112 = tpu.matmul %107, %111, %cst_33 {dimension_numbers = #tpu.dot_dimension_numbers<[1], [0], [0], [1], [0, 0, 1, 1], [], []>} : vector<8x64xf32>, vector<64x256xf32>, vector<8x256xf32> -> vector<8x256xf32>
    %113 = arith.addf %110, %112 : vector<8x256xf32>
    %114 = vector.extract_strided_slice %113 {offsets = [0, 0], sizes = [8, 192], strides = [1, 1]} : vector<8x256xf32> to vector<8x192xf32>
    %115 = arith.negf %114 : vector<8x192xf32>
    %116 = math.exp %115 : vector<8x192xf32>
    %cst_34 = arith.constant 1.000000e+00 : f32
    %117 = vector.broadcast %cst_34 : f32 to vector<8x192xf32>
    %118 = arith.addf %117, %116 : vector<8x192xf32>
    %119 = arith.divf %117, %118 : vector<8x192xf32>
    %120 = vector.extract_strided_slice %113 {offsets = [0, 192], sizes = [8, 64], strides = [1, 1]} : vector<8x256xf32> to vector<8x64xf32>
    %121 = math.tanh %120 : vector<8x64xf32>
    %122 = vector.extract_strided_slice %119 {offsets = [0, 0], sizes = [8, 64], strides = [1, 1]} : vector<8x192xf32> to vector<8x64xf32>
    %123 = vector.extract_strided_slice %119 {offsets = [0, 64], sizes = [8, 64], strides = [1, 1]} : vector<8x192xf32> to vector<8x64xf32>
    %124 = vector.extract_strided_slice %119 {offsets = [0, 128], sizes = [8, 64], strides = [1, 1]} : vector<8x192xf32> to vector<8x64xf32>
    %125 = arith.mulf %123, %105 : vector<8x64xf32>
    %126 = arith.mulf %122, %121 : vector<8x64xf32>
    %127 = arith.addf %125, %126 : vector<8x64xf32>
    %128 = math.tanh %127 : vector<8x64xf32>
    %129 = arith.mulf %124, %128 : vector<8x64xf32>
    %130 = vector.extract_strided_slice %12 {offsets = [40, 0], sizes = [8, 256], strides = [1, 1]} : vector<64x256xf32> to vector<8x256xf32>
    %131 = vector.extract_strided_slice %17 {offsets = [16, 0], sizes = [8, 256], strides = [1, 1]} : vector<64x256xf32> to vector<8x256xf32>
    %132 = arith.addf %130, %131 : vector<8x256xf32>
    %c0_35 = arith.constant 0 : index
    %c0_36 = arith.constant 0 : index
    %133 = vector.load %arg6[%c0_35, %c0_36] : memref<64x256xf32, #tpu.memory_space<vmem>>, vector<64x256xf32>
    %cst_37 = arith.constant dense<0.000000e+00> : vector<8x256xf32>
    %134 = tpu.matmul %129, %133, %cst_37 {dimension_numbers = #tpu.dot_dimension_numbers<[1], [0], [0], [1], [0, 0, 1, 1], [], []>} : vector<8x64xf32>, vector<64x256xf32>, vector<8x256xf32> -> vector<8x256xf32>
    %135 = arith.addf %132, %134 : vector<8x256xf32>
    %136 = vector.extract_strided_slice %135 {offsets = [0, 0], sizes = [8, 192], strides = [1, 1]} : vector<8x256xf32> to vector<8x192xf32>
    %137 = arith.negf %136 : vector<8x192xf32>
    %138 = math.exp %137 : vector<8x192xf32>
    %cst_38 = arith.constant 1.000000e+00 : f32
    %139 = vector.broadcast %cst_38 : f32 to vector<8x192xf32>
    %140 = arith.addf %139, %138 : vector<8x192xf32>
    %141 = arith.divf %139, %140 : vector<8x192xf32>
    %142 = vector.extract_strided_slice %135 {offsets = [0, 192], sizes = [8, 64], strides = [1, 1]} : vector<8x256xf32> to vector<8x64xf32>
    %143 = math.tanh %142 : vector<8x64xf32>
    %144 = vector.extract_strided_slice %141 {offsets = [0, 0], sizes = [8, 64], strides = [1, 1]} : vector<8x192xf32> to vector<8x64xf32>
    %145 = vector.extract_strided_slice %141 {offsets = [0, 64], sizes = [8, 64], strides = [1, 1]} : vector<8x192xf32> to vector<8x64xf32>
    %146 = vector.extract_strided_slice %141 {offsets = [0, 128], sizes = [8, 64], strides = [1, 1]} : vector<8x192xf32> to vector<8x64xf32>
    %147 = arith.mulf %145, %127 : vector<8x64xf32>
    %148 = arith.mulf %144, %143 : vector<8x64xf32>
    %149 = arith.addf %147, %148 : vector<8x64xf32>
    %150 = math.tanh %149 : vector<8x64xf32>
    %151 = arith.mulf %146, %150 : vector<8x64xf32>
    %152 = vector.extract_strided_slice %12 {offsets = [48, 0], sizes = [8, 256], strides = [1, 1]} : vector<64x256xf32> to vector<8x256xf32>
    %153 = vector.extract_strided_slice %17 {offsets = [8, 0], sizes = [8, 256], strides = [1, 1]} : vector<64x256xf32> to vector<8x256xf32>
    %154 = arith.addf %152, %153 : vector<8x256xf32>
    %c0_39 = arith.constant 0 : index
    %c0_40 = arith.constant 0 : index
    %155 = vector.load %arg6[%c0_39, %c0_40] : memref<64x256xf32, #tpu.memory_space<vmem>>, vector<64x256xf32>
    %cst_41 = arith.constant dense<0.000000e+00> : vector<8x256xf32>
    %156 = tpu.matmul %151, %155, %cst_41 {dimension_numbers = #tpu.dot_dimension_numbers<[1], [0], [0], [1], [0, 0, 1, 1], [], []>} : vector<8x64xf32>, vector<64x256xf32>, vector<8x256xf32> -> vector<8x256xf32>
    %157 = arith.addf %154, %156 : vector<8x256xf32>
    %158 = vector.extract_strided_slice %157 {offsets = [0, 0], sizes = [8, 192], strides = [1, 1]} : vector<8x256xf32> to vector<8x192xf32>
    %159 = arith.negf %158 : vector<8x192xf32>
    %160 = math.exp %159 : vector<8x192xf32>
    %cst_42 = arith.constant 1.000000e+00 : f32
    %161 = vector.broadcast %cst_42 : f32 to vector<8x192xf32>
    %162 = arith.addf %161, %160 : vector<8x192xf32>
    %163 = arith.divf %161, %162 : vector<8x192xf32>
    %164 = vector.extract_strided_slice %157 {offsets = [0, 192], sizes = [8, 64], strides = [1, 1]} : vector<8x256xf32> to vector<8x64xf32>
    %165 = math.tanh %164 : vector<8x64xf32>
    %166 = vector.extract_strided_slice %163 {offsets = [0, 0], sizes = [8, 64], strides = [1, 1]} : vector<8x192xf32> to vector<8x64xf32>
    %167 = vector.extract_strided_slice %163 {offsets = [0, 64], sizes = [8, 64], strides = [1, 1]} : vector<8x192xf32> to vector<8x64xf32>
    %168 = vector.extract_strided_slice %163 {offsets = [0, 128], sizes = [8, 64], strides = [1, 1]} : vector<8x192xf32> to vector<8x64xf32>
    %169 = arith.mulf %167, %149 : vector<8x64xf32>
    %170 = arith.mulf %166, %165 : vector<8x64xf32>
    %171 = arith.addf %169, %170 : vector<8x64xf32>
    %172 = math.tanh %171 : vector<8x64xf32>
    %173 = arith.mulf %168, %172 : vector<8x64xf32>
    %174 = vector.extract_strided_slice %12 {offsets = [56, 0], sizes = [8, 256], strides = [1, 1]} : vector<64x256xf32> to vector<8x256xf32>
    %175 = vector.extract_strided_slice %17 {offsets = [0, 0], sizes = [8, 256], strides = [1, 1]} : vector<64x256xf32> to vector<8x256xf32>
    %176 = arith.addf %174, %175 : vector<8x256xf32>
    %c0_43 = arith.constant 0 : index
    %c0_44 = arith.constant 0 : index
    %177 = vector.load %arg6[%c0_43, %c0_44] : memref<64x256xf32, #tpu.memory_space<vmem>>, vector<64x256xf32>
    %cst_45 = arith.constant dense<0.000000e+00> : vector<8x256xf32>
    %178 = tpu.matmul %173, %177, %cst_45 {dimension_numbers = #tpu.dot_dimension_numbers<[1], [0], [0], [1], [0, 0, 1, 1], [], []>} : vector<8x64xf32>, vector<64x256xf32>, vector<8x256xf32> -> vector<8x256xf32>
    %179 = arith.addf %176, %178 : vector<8x256xf32>
    %180 = vector.extract_strided_slice %179 {offsets = [0, 0], sizes = [8, 192], strides = [1, 1]} : vector<8x256xf32> to vector<8x192xf32>
    %181 = arith.negf %180 : vector<8x192xf32>
    %182 = math.exp %181 : vector<8x192xf32>
    %cst_46 = arith.constant 1.000000e+00 : f32
    %183 = vector.broadcast %cst_46 : f32 to vector<8x192xf32>
    %184 = arith.addf %183, %182 : vector<8x192xf32>
    %185 = arith.divf %183, %184 : vector<8x192xf32>
    %186 = vector.extract_strided_slice %179 {offsets = [0, 192], sizes = [8, 64], strides = [1, 1]} : vector<8x256xf32> to vector<8x64xf32>
    %187 = math.tanh %186 : vector<8x64xf32>
    %188 = vector.extract_strided_slice %185 {offsets = [0, 0], sizes = [8, 64], strides = [1, 1]} : vector<8x192xf32> to vector<8x64xf32>
    %189 = vector.extract_strided_slice %185 {offsets = [0, 64], sizes = [8, 64], strides = [1, 1]} : vector<8x192xf32> to vector<8x64xf32>
    %190 = vector.extract_strided_slice %185 {offsets = [0, 128], sizes = [8, 64], strides = [1, 1]} : vector<8x192xf32> to vector<8x64xf32>
    %191 = arith.mulf %189, %171 : vector<8x64xf32>
    %192 = arith.mulf %188, %187 : vector<8x64xf32>
    %193 = arith.addf %191, %192 : vector<8x64xf32>
    %194 = math.tanh %193 : vector<8x64xf32>
    %195 = arith.mulf %190, %194 : vector<8x64xf32>
    %196 = tpu.iota {dimensions = array<i32: 1>} : vector<8x64xi32>
    %c32_i32 = arith.constant 32 : i32
    %197 = vector.broadcast %c32_i32 : i32 to vector<8x64xi32>
    %198 = arith.cmpi slt, %196, %197 : vector<8x64xi32>
    %199 = arith.select %198, %41, %195 : vector<8x64xi1>, vector<8x64xf32>
    %200 = arith.select %198, %63, %173 : vector<8x64xi1>, vector<8x64xf32>
    %201 = arith.select %198, %85, %151 : vector<8x64xi1>, vector<8x64xf32>
    %202 = arith.select %198, %107, %129 : vector<8x64xi1>, vector<8x64xf32>
    %203 = arith.select %198, %129, %107 : vector<8x64xi1>, vector<8x64xf32>
    %204 = arith.select %198, %151, %85 : vector<8x64xi1>, vector<8x64xf32>
    %205 = arith.select %198, %173, %63 : vector<8x64xi1>, vector<8x64xf32>
    %206 = arith.select %198, %195, %41 : vector<8x64xi1>, vector<8x64xf32>
    %207 = tpu.concatenate %199, %200, %201, %202, %203, %204, %205, %206 in 0 : vector<8x64xf32>, vector<8x64xf32>, vector<8x64xf32>, vector<8x64xf32>, vector<8x64xf32>, vector<8x64xf32>, vector<8x64xf32>, vector<8x64xf32> -> vector<64x64xf32>
    %c0_47 = arith.constant 0 : index
    %c0_48 = arith.constant 0 : index
    %208 = vector.load %arg7[%c0_47, %c0_48] : memref<64x128xf32, #tpu.memory_space<vmem>>, vector<64x128xf32>
    %cst_49 = arith.constant dense<0.000000e+00> : vector<64x128xf32>
    %209 = tpu.matmul %207, %208, %cst_49 {dimension_numbers = #tpu.dot_dimension_numbers<[1], [0], [0], [1], [0, 0, 1, 1], [], []>} : vector<64x64xf32>, vector<64x128xf32>, vector<64x128xf32> -> vector<64x128xf32>
    %c0_50 = arith.constant 0 : index
    %c0_51 = arith.constant 0 : index
    %210 = vector.load %arg9[%c0_50, %c0_51] : memref<1x128xf32, #tpu.memory_space<vmem>>, vector<1x128xf32>
    %211 = vector.broadcast %210 : vector<1x128xf32> to vector<64x128xf32>
    %212 = arith.addf %209, %211 : vector<64x128xf32>
    %cst_52 = arith.constant 0.000000e+00 : f32
    %213 = vector.broadcast %cst_52 : f32 to vector<8x32xf32>
    %cst_53 = arith.constant 0.000000e+00 : f32
    %214 = vector.broadcast %cst_53 : f32 to vector<8x32xf32>
    %215 = vector.extract_strided_slice %212 {offsets = [0, 0], sizes = [8, 128], strides = [1, 1]} : vector<64x128xf32> to vector<8x128xf32>
    %c0_54 = arith.constant 0 : index
    %c0_55 = arith.constant 0 : index
    %216 = vector.load %arg8[%c0_54, %c0_55] : memref<32x128xf32, #tpu.memory_space<vmem>>, vector<32x128xf32>
    %cst_56 = arith.constant dense<0.000000e+00> : vector<8x128xf32>
    %217 = tpu.matmul %213, %216, %cst_56 {dimension_numbers = #tpu.dot_dimension_numbers<[1], [0], [0], [1], [0, 0, 1, 1], [], []>} : vector<8x32xf32>, vector<32x128xf32>, vector<8x128xf32> -> vector<8x128xf32>
    %218 = arith.addf %215, %217 : vector<8x128xf32>
    %219 = vector.extract_strided_slice %218 {offsets = [0, 0], sizes = [8, 96], strides = [1, 1]} : vector<8x128xf32> to vector<8x96xf32>
    %220 = arith.negf %219 : vector<8x96xf32>
    %221 = math.exp %220 : vector<8x96xf32>
    %cst_57 = arith.constant 1.000000e+00 : f32
    %222 = vector.broadcast %cst_57 : f32 to vector<8x96xf32>
    %223 = arith.addf %222, %221 : vector<8x96xf32>
    %224 = arith.divf %222, %223 : vector<8x96xf32>
    %225 = vector.extract_strided_slice %218 {offsets = [0, 96], sizes = [8, 32], strides = [1, 1]} : vector<8x128xf32> to vector<8x32xf32>
    %226 = math.tanh %225 : vector<8x32xf32>
    %227 = vector.extract_strided_slice %224 {offsets = [0, 0], sizes = [8, 32], strides = [1, 1]} : vector<8x96xf32> to vector<8x32xf32>
    %228 = vector.extract_strided_slice %224 {offsets = [0, 32], sizes = [8, 32], strides = [1, 1]} : vector<8x96xf32> to vector<8x32xf32>
    %229 = vector.extract_strided_slice %224 {offsets = [0, 64], sizes = [8, 32], strides = [1, 1]} : vector<8x96xf32> to vector<8x32xf32>
    %230 = arith.mulf %228, %214 : vector<8x32xf32>
    %231 = arith.mulf %227, %226 : vector<8x32xf32>
    %232 = arith.addf %230, %231 : vector<8x32xf32>
    %233 = math.tanh %232 : vector<8x32xf32>
    %234 = arith.mulf %229, %233 : vector<8x32xf32>
    %235 = vector.extract_strided_slice %212 {offsets = [8, 0], sizes = [8, 128], strides = [1, 1]} : vector<64x128xf32> to vector<8x128xf32>
    %c0_58 = arith.constant 0 : index
    %c0_59 = arith.constant 0 : index
    %236 = vector.load %arg8[%c0_58, %c0_59] : memref<32x128xf32, #tpu.memory_space<vmem>>, vector<32x128xf32>
    %cst_60 = arith.constant dense<0.000000e+00> : vector<8x128xf32>
    %237 = tpu.matmul %234, %236, %cst_60 {dimension_numbers = #tpu.dot_dimension_numbers<[1], [0], [0], [1], [0, 0, 1, 1], [], []>} : vector<8x32xf32>, vector<32x128xf32>, vector<8x128xf32> -> vector<8x128xf32>
    %238 = arith.addf %235, %237 : vector<8x128xf32>
    %239 = vector.extract_strided_slice %238 {offsets = [0, 0], sizes = [8, 96], strides = [1, 1]} : vector<8x128xf32> to vector<8x96xf32>
    %240 = arith.negf %239 : vector<8x96xf32>
    %241 = math.exp %240 : vector<8x96xf32>
    %cst_61 = arith.constant 1.000000e+00 : f32
    %242 = vector.broadcast %cst_61 : f32 to vector<8x96xf32>
    %243 = arith.addf %242, %241 : vector<8x96xf32>
    %244 = arith.divf %242, %243 : vector<8x96xf32>
    %245 = vector.extract_strided_slice %238 {offsets = [0, 96], sizes = [8, 32], strides = [1, 1]} : vector<8x128xf32> to vector<8x32xf32>
    %246 = math.tanh %245 : vector<8x32xf32>
    %247 = vector.extract_strided_slice %244 {offsets = [0, 0], sizes = [8, 32], strides = [1, 1]} : vector<8x96xf32> to vector<8x32xf32>
    %248 = vector.extract_strided_slice %244 {offsets = [0, 32], sizes = [8, 32], strides = [1, 1]} : vector<8x96xf32> to vector<8x32xf32>
    %249 = vector.extract_strided_slice %244 {offsets = [0, 64], sizes = [8, 32], strides = [1, 1]} : vector<8x96xf32> to vector<8x32xf32>
    %250 = arith.mulf %248, %232 : vector<8x32xf32>
    %251 = arith.mulf %247, %246 : vector<8x32xf32>
    %252 = arith.addf %250, %251 : vector<8x32xf32>
    %253 = math.tanh %252 : vector<8x32xf32>
    %254 = arith.mulf %249, %253 : vector<8x32xf32>
    %255 = vector.extract_strided_slice %212 {offsets = [16, 0], sizes = [8, 128], strides = [1, 1]} : vector<64x128xf32> to vector<8x128xf32>
    %c0_62 = arith.constant 0 : index
    %c0_63 = arith.constant 0 : index
    %256 = vector.load %arg8[%c0_62, %c0_63] : memref<32x128xf32, #tpu.memory_space<vmem>>, vector<32x128xf32>
    %cst_64 = arith.constant dense<0.000000e+00> : vector<8x128xf32>
    %257 = tpu.matmul %254, %256, %cst_64 {dimension_numbers = #tpu.dot_dimension_numbers<[1], [0], [0], [1], [0, 0, 1, 1], [], []>} : vector<8x32xf32>, vector<32x128xf32>, vector<8x128xf32> -> vector<8x128xf32>
    %258 = arith.addf %255, %257 : vector<8x128xf32>
    %259 = vector.extract_strided_slice %258 {offsets = [0, 0], sizes = [8, 96], strides = [1, 1]} : vector<8x128xf32> to vector<8x96xf32>
    %260 = arith.negf %259 : vector<8x96xf32>
    %261 = math.exp %260 : vector<8x96xf32>
    %cst_65 = arith.constant 1.000000e+00 : f32
    %262 = vector.broadcast %cst_65 : f32 to vector<8x96xf32>
    %263 = arith.addf %262, %261 : vector<8x96xf32>
    %264 = arith.divf %262, %263 : vector<8x96xf32>
    %265 = vector.extract_strided_slice %258 {offsets = [0, 96], sizes = [8, 32], strides = [1, 1]} : vector<8x128xf32> to vector<8x32xf32>
    %266 = math.tanh %265 : vector<8x32xf32>
    %267 = vector.extract_strided_slice %264 {offsets = [0, 0], sizes = [8, 32], strides = [1, 1]} : vector<8x96xf32> to vector<8x32xf32>
    %268 = vector.extract_strided_slice %264 {offsets = [0, 32], sizes = [8, 32], strides = [1, 1]} : vector<8x96xf32> to vector<8x32xf32>
    %269 = vector.extract_strided_slice %264 {offsets = [0, 64], sizes = [8, 32], strides = [1, 1]} : vector<8x96xf32> to vector<8x32xf32>
    %270 = arith.mulf %268, %252 : vector<8x32xf32>
    %271 = arith.mulf %267, %266 : vector<8x32xf32>
    %272 = arith.addf %270, %271 : vector<8x32xf32>
    %273 = math.tanh %272 : vector<8x32xf32>
    %274 = arith.mulf %269, %273 : vector<8x32xf32>
    %275 = vector.extract_strided_slice %212 {offsets = [24, 0], sizes = [8, 128], strides = [1, 1]} : vector<64x128xf32> to vector<8x128xf32>
    %c0_66 = arith.constant 0 : index
    %c0_67 = arith.constant 0 : index
    %276 = vector.load %arg8[%c0_66, %c0_67] : memref<32x128xf32, #tpu.memory_space<vmem>>, vector<32x128xf32>
    %cst_68 = arith.constant dense<0.000000e+00> : vector<8x128xf32>
    %277 = tpu.matmul %274, %276, %cst_68 {dimension_numbers = #tpu.dot_dimension_numbers<[1], [0], [0], [1], [0, 0, 1, 1], [], []>} : vector<8x32xf32>, vector<32x128xf32>, vector<8x128xf32> -> vector<8x128xf32>
    %278 = arith.addf %275, %277 : vector<8x128xf32>
    %279 = vector.extract_strided_slice %278 {offsets = [0, 0], sizes = [8, 96], strides = [1, 1]} : vector<8x128xf32> to vector<8x96xf32>
    %280 = arith.negf %279 : vector<8x96xf32>
    %281 = math.exp %280 : vector<8x96xf32>
    %cst_69 = arith.constant 1.000000e+00 : f32
    %282 = vector.broadcast %cst_69 : f32 to vector<8x96xf32>
    %283 = arith.addf %282, %281 : vector<8x96xf32>
    %284 = arith.divf %282, %283 : vector<8x96xf32>
    %285 = vector.extract_strided_slice %278 {offsets = [0, 96], sizes = [8, 32], strides = [1, 1]} : vector<8x128xf32> to vector<8x32xf32>
    %286 = math.tanh %285 : vector<8x32xf32>
    %287 = vector.extract_strided_slice %284 {offsets = [0, 0], sizes = [8, 32], strides = [1, 1]} : vector<8x96xf32> to vector<8x32xf32>
    %288 = vector.extract_strided_slice %284 {offsets = [0, 32], sizes = [8, 32], strides = [1, 1]} : vector<8x96xf32> to vector<8x32xf32>
    %289 = vector.extract_strided_slice %284 {offsets = [0, 64], sizes = [8, 32], strides = [1, 1]} : vector<8x96xf32> to vector<8x32xf32>
    %290 = arith.mulf %288, %272 : vector<8x32xf32>
    %291 = arith.mulf %287, %286 : vector<8x32xf32>
    %292 = arith.addf %290, %291 : vector<8x32xf32>
    %293 = math.tanh %292 : vector<8x32xf32>
    %294 = arith.mulf %289, %293 : vector<8x32xf32>
    %295 = vector.extract_strided_slice %212 {offsets = [32, 0], sizes = [8, 128], strides = [1, 1]} : vector<64x128xf32> to vector<8x128xf32>
    %c0_70 = arith.constant 0 : index
    %c0_71 = arith.constant 0 : index
    %296 = vector.load %arg8[%c0_70, %c0_71] : memref<32x128xf32, #tpu.memory_space<vmem>>, vector<32x128xf32>
    %cst_72 = arith.constant dense<0.000000e+00> : vector<8x128xf32>
    %297 = tpu.matmul %294, %296, %cst_72 {dimension_numbers = #tpu.dot_dimension_numbers<[1], [0], [0], [1], [0, 0, 1, 1], [], []>} : vector<8x32xf32>, vector<32x128xf32>, vector<8x128xf32> -> vector<8x128xf32>
    %298 = arith.addf %295, %297 : vector<8x128xf32>
    %299 = vector.extract_strided_slice %298 {offsets = [0, 0], sizes = [8, 96], strides = [1, 1]} : vector<8x128xf32> to vector<8x96xf32>
    %300 = arith.negf %299 : vector<8x96xf32>
    %301 = math.exp %300 : vector<8x96xf32>
    %cst_73 = arith.constant 1.000000e+00 : f32
    %302 = vector.broadcast %cst_73 : f32 to vector<8x96xf32>
    %303 = arith.addf %302, %301 : vector<8x96xf32>
    %304 = arith.divf %302, %303 : vector<8x96xf32>
    %305 = vector.extract_strided_slice %298 {offsets = [0, 96], sizes = [8, 32], strides = [1, 1]} : vector<8x128xf32> to vector<8x32xf32>
    %306 = math.tanh %305 : vector<8x32xf32>
    %307 = vector.extract_strided_slice %304 {offsets = [0, 0], sizes = [8, 32], strides = [1, 1]} : vector<8x96xf32> to vector<8x32xf32>
    %308 = vector.extract_strided_slice %304 {offsets = [0, 32], sizes = [8, 32], strides = [1, 1]} : vector<8x96xf32> to vector<8x32xf32>
    %309 = vector.extract_strided_slice %304 {offsets = [0, 64], sizes = [8, 32], strides = [1, 1]} : vector<8x96xf32> to vector<8x32xf32>
    %310 = arith.mulf %308, %292 : vector<8x32xf32>
    %311 = arith.mulf %307, %306 : vector<8x32xf32>
    %312 = arith.addf %310, %311 : vector<8x32xf32>
    %313 = math.tanh %312 : vector<8x32xf32>
    %314 = arith.mulf %309, %313 : vector<8x32xf32>
    %315 = vector.extract_strided_slice %212 {offsets = [40, 0], sizes = [8, 128], strides = [1, 1]} : vector<64x128xf32> to vector<8x128xf32>
    %c0_74 = arith.constant 0 : index
    %c0_75 = arith.constant 0 : index
    %316 = vector.load %arg8[%c0_74, %c0_75] : memref<32x128xf32, #tpu.memory_space<vmem>>, vector<32x128xf32>
    %cst_76 = arith.constant dense<0.000000e+00> : vector<8x128xf32>
    %317 = tpu.matmul %314, %316, %cst_76 {dimension_numbers = #tpu.dot_dimension_numbers<[1], [0], [0], [1], [0, 0, 1, 1], [], []>} : vector<8x32xf32>, vector<32x128xf32>, vector<8x128xf32> -> vector<8x128xf32>
    %318 = arith.addf %315, %317 : vector<8x128xf32>
    %319 = vector.extract_strided_slice %318 {offsets = [0, 0], sizes = [8, 96], strides = [1, 1]} : vector<8x128xf32> to vector<8x96xf32>
    %320 = arith.negf %319 : vector<8x96xf32>
    %321 = math.exp %320 : vector<8x96xf32>
    %cst_77 = arith.constant 1.000000e+00 : f32
    %322 = vector.broadcast %cst_77 : f32 to vector<8x96xf32>
    %323 = arith.addf %322, %321 : vector<8x96xf32>
    %324 = arith.divf %322, %323 : vector<8x96xf32>
    %325 = vector.extract_strided_slice %318 {offsets = [0, 96], sizes = [8, 32], strides = [1, 1]} : vector<8x128xf32> to vector<8x32xf32>
    %326 = math.tanh %325 : vector<8x32xf32>
    %327 = vector.extract_strided_slice %324 {offsets = [0, 0], sizes = [8, 32], strides = [1, 1]} : vector<8x96xf32> to vector<8x32xf32>
    %328 = vector.extract_strided_slice %324 {offsets = [0, 32], sizes = [8, 32], strides = [1, 1]} : vector<8x96xf32> to vector<8x32xf32>
    %329 = vector.extract_strided_slice %324 {offsets = [0, 64], sizes = [8, 32], strides = [1, 1]} : vector<8x96xf32> to vector<8x32xf32>
    %330 = arith.mulf %328, %312 : vector<8x32xf32>
    %331 = arith.mulf %327, %326 : vector<8x32xf32>
    %332 = arith.addf %330, %331 : vector<8x32xf32>
    %333 = math.tanh %332 : vector<8x32xf32>
    %334 = arith.mulf %329, %333 : vector<8x32xf32>
    %335 = vector.extract_strided_slice %212 {offsets = [48, 0], sizes = [8, 128], strides = [1, 1]} : vector<64x128xf32> to vector<8x128xf32>
    %c0_78 = arith.constant 0 : index
    %c0_79 = arith.constant 0 : index
    %336 = vector.load %arg8[%c0_78, %c0_79] : memref<32x128xf32, #tpu.memory_space<vmem>>, vector<32x128xf32>
    %cst_80 = arith.constant dense<0.000000e+00> : vector<8x128xf32>
    %337 = tpu.matmul %334, %336, %cst_80 {dimension_numbers = #tpu.dot_dimension_numbers<[1], [0], [0], [1], [0, 0, 1, 1], [], []>} : vector<8x32xf32>, vector<32x128xf32>, vector<8x128xf32> -> vector<8x128xf32>
    %338 = arith.addf %335, %337 : vector<8x128xf32>
    %339 = vector.extract_strided_slice %338 {offsets = [0, 0], sizes = [8, 96], strides = [1, 1]} : vector<8x128xf32> to vector<8x96xf32>
    %340 = arith.negf %339 : vector<8x96xf32>
    %341 = math.exp %340 : vector<8x96xf32>
    %cst_81 = arith.constant 1.000000e+00 : f32
    %342 = vector.broadcast %cst_81 : f32 to vector<8x96xf32>
    %343 = arith.addf %342, %341 : vector<8x96xf32>
    %344 = arith.divf %342, %343 : vector<8x96xf32>
    %345 = vector.extract_strided_slice %338 {offsets = [0, 96], sizes = [8, 32], strides = [1, 1]} : vector<8x128xf32> to vector<8x32xf32>
    %346 = math.tanh %345 : vector<8x32xf32>
    %347 = vector.extract_strided_slice %344 {offsets = [0, 0], sizes = [8, 32], strides = [1, 1]} : vector<8x96xf32> to vector<8x32xf32>
    %348 = vector.extract_strided_slice %344 {offsets = [0, 32], sizes = [8, 32], strides = [1, 1]} : vector<8x96xf32> to vector<8x32xf32>
    %349 = vector.extract_strided_slice %344 {offsets = [0, 64], sizes = [8, 32], strides = [1, 1]} : vector<8x96xf32> to vector<8x32xf32>
    %350 = arith.mulf %348, %332 : vector<8x32xf32>
    %351 = arith.mulf %347, %346 : vector<8x32xf32>
    %352 = arith.addf %350, %351 : vector<8x32xf32>
    %353 = math.tanh %352 : vector<8x32xf32>
    %354 = arith.mulf %349, %353 : vector<8x32xf32>
    %355 = vector.extract_strided_slice %212 {offsets = [56, 0], sizes = [8, 128], strides = [1, 1]} : vector<64x128xf32> to vector<8x128xf32>
    %c0_82 = arith.constant 0 : index
    %c0_83 = arith.constant 0 : index
    %356 = vector.load %arg8[%c0_82, %c0_83] : memref<32x128xf32, #tpu.memory_space<vmem>>, vector<32x128xf32>
    %cst_84 = arith.constant dense<0.000000e+00> : vector<8x128xf32>
    %357 = tpu.matmul %354, %356, %cst_84 {dimension_numbers = #tpu.dot_dimension_numbers<[1], [0], [0], [1], [0, 0, 1, 1], [], []>} : vector<8x32xf32>, vector<32x128xf32>, vector<8x128xf32> -> vector<8x128xf32>
    %358 = arith.addf %355, %357 : vector<8x128xf32>
    %359 = vector.extract_strided_slice %358 {offsets = [0, 0], sizes = [8, 96], strides = [1, 1]} : vector<8x128xf32> to vector<8x96xf32>
    %360 = arith.negf %359 : vector<8x96xf32>
    %361 = math.exp %360 : vector<8x96xf32>
    %cst_85 = arith.constant 1.000000e+00 : f32
    %362 = vector.broadcast %cst_85 : f32 to vector<8x96xf32>
    %363 = arith.addf %362, %361 : vector<8x96xf32>
    %364 = arith.divf %362, %363 : vector<8x96xf32>
    %365 = vector.extract_strided_slice %358 {offsets = [0, 96], sizes = [8, 32], strides = [1, 1]} : vector<8x128xf32> to vector<8x32xf32>
    %366 = math.tanh %365 : vector<8x32xf32>
    %367 = vector.extract_strided_slice %364 {offsets = [0, 0], sizes = [8, 32], strides = [1, 1]} : vector<8x96xf32> to vector<8x32xf32>
    %368 = vector.extract_strided_slice %364 {offsets = [0, 32], sizes = [8, 32], strides = [1, 1]} : vector<8x96xf32> to vector<8x32xf32>
    %369 = vector.extract_strided_slice %364 {offsets = [0, 64], sizes = [8, 32], strides = [1, 1]} : vector<8x96xf32> to vector<8x32xf32>
    %370 = arith.mulf %368, %352 : vector<8x32xf32>
    %371 = arith.mulf %367, %366 : vector<8x32xf32>
    %372 = arith.addf %370, %371 : vector<8x32xf32>
    %373 = math.tanh %372 : vector<8x32xf32>
    %374 = arith.mulf %369, %373 : vector<8x32xf32>
    %375 = vector.extract_strided_slice %207 {offsets = [56, 0], sizes = [8, 64], strides = [1, 1]} : vector<64x64xf32> to vector<8x64xf32>
    %c0_86 = arith.constant 0 : index
    %c0_87 = arith.constant 0 : index
    %376 = vector.load %arg10[%c0_86, %c0_87] : memref<64x128xf32, #tpu.memory_space<vmem>>, vector<64x128xf32>
    %cst_88 = arith.constant dense<0.000000e+00> : vector<8x128xf32>
    %377 = tpu.matmul %375, %376, %cst_88 {dimension_numbers = #tpu.dot_dimension_numbers<[1], [0], [0], [1], [0, 0, 1, 1], [], []>} : vector<8x64xf32>, vector<64x128xf32>, vector<8x128xf32> -> vector<8x128xf32>
    %c0_89 = arith.constant 0 : index
    %c0_90 = arith.constant 0 : index
    %378 = vector.load %arg11[%c0_89, %c0_90] : memref<1x128xf32, #tpu.memory_space<vmem>>, vector<1x128xf32>
    %379 = vector.broadcast %378 : vector<1x128xf32> to vector<8x128xf32>
    %380 = arith.addf %377, %379 : vector<8x128xf32>
    %cst_91 = arith.constant 0.000000e+00 : f32
    %381 = vector.broadcast %cst_91 : f32 to vector<8x32xf32>
    %382 = vector.extract_strided_slice %380 {offsets = [0, 0], sizes = [8, 96], strides = [1, 1]} : vector<8x128xf32> to vector<8x96xf32>
    %383 = arith.negf %382 : vector<8x96xf32>
    %384 = math.exp %383 : vector<8x96xf32>
    %cst_92 = arith.constant 1.000000e+00 : f32
    %385 = vector.broadcast %cst_92 : f32 to vector<8x96xf32>
    %386 = arith.addf %385, %384 : vector<8x96xf32>
    %387 = arith.divf %385, %386 : vector<8x96xf32>
    %388 = vector.extract_strided_slice %380 {offsets = [0, 96], sizes = [8, 32], strides = [1, 1]} : vector<8x128xf32> to vector<8x32xf32>
    %389 = math.tanh %388 : vector<8x32xf32>
    %390 = vector.extract_strided_slice %387 {offsets = [0, 0], sizes = [8, 32], strides = [1, 1]} : vector<8x96xf32> to vector<8x32xf32>
    %391 = vector.extract_strided_slice %387 {offsets = [0, 32], sizes = [8, 32], strides = [1, 1]} : vector<8x96xf32> to vector<8x32xf32>
    %392 = vector.extract_strided_slice %387 {offsets = [0, 64], sizes = [8, 32], strides = [1, 1]} : vector<8x96xf32> to vector<8x32xf32>
    %393 = arith.mulf %391, %381 : vector<8x32xf32>
    %394 = arith.mulf %390, %389 : vector<8x32xf32>
    %395 = arith.addf %393, %394 : vector<8x32xf32>
    %396 = math.tanh %395 : vector<8x32xf32>
    %397 = arith.mulf %392, %396 : vector<8x32xf32>
    %c0_93 = arith.constant 0 : index
    %c0_94 = arith.constant 0 : index
    %398 = vector.load %arg12[%c0_93, %c0_94] : memref<64x128xf32, #tpu.memory_space<vmem>>, vector<64x128xf32>
    %399 = vector.extract_strided_slice %398 {offsets = [0, 0], sizes = [32, 128], strides = [1, 1]} : vector<64x128xf32> to vector<32x128xf32>
    %cst_95 = arith.constant dense<0.000000e+00> : vector<8x128xf32>
    %400 = tpu.matmul %374, %399, %cst_95 {dimension_numbers = #tpu.dot_dimension_numbers<[1], [0], [0], [1], [0, 0, 1, 1], [], []>} : vector<8x32xf32>, vector<32x128xf32>, vector<8x128xf32> -> vector<8x128xf32>
    %401 = vector.extract_strided_slice %398 {offsets = [32, 0], sizes = [32, 128], strides = [1, 1]} : vector<64x128xf32> to vector<32x128xf32>
    %cst_96 = arith.constant dense<0.000000e+00> : vector<8x128xf32>
    %402 = tpu.matmul %397, %401, %cst_96 {dimension_numbers = #tpu.dot_dimension_numbers<[1], [0], [0], [1], [0, 0, 1, 1], [], []>} : vector<8x32xf32>, vector<32x128xf32>, vector<8x128xf32> -> vector<8x128xf32>
    %403 = arith.addf %400, %402 : vector<8x128xf32>
    %c0_97 = arith.constant 0 : index
    %c0_98 = arith.constant 0 : index
    %404 = vector.load %arg13[%c0_97, %c0_98] : memref<1x128xf32, #tpu.memory_space<vmem>>, vector<1x128xf32>
    %405 = vector.broadcast %404 : vector<1x128xf32> to vector<8x128xf32>
    %406 = arith.addf %403, %405 : vector<8x128xf32>
    %c0_99 = arith.constant 0 : index
    %c0_100 = arith.constant 0 : index
    %407 = vector.load %arg14[%c0_99, %c0_100] : memref<8x128xf32, #tpu.memory_space<vmem>>, vector<8x128xf32>
    tpu.vector_store %arg14[%c0_99, %c0_100], %406 {strides = array<i32>} : memref<8x128xf32, #tpu.memory_space<vmem>>, vector<8x128xf32>,
    return
  }
}

</mosaic_0001>

<bundles_post_ra>
// kernel: textrnn_forward.1
= control target key start
LH: loop header
LB: loop body
LE: loop exit
PB: predicated region body
PF: predicated region fallthrough
CT: control target
= control target key end

     0   :  { %v3526_v0 = vmov 0   ;;  %v55_v45 = vlaneseq  ;;  %v3527_v49 = vmov 1.0   ;;  %v3528_v56 = vmov 0.0   ;;  %s4307_s0 = inlined_call_operand.vmem [shape: s32[64,1], index: 0, kind: input, shape index: {}]   ;;  %s4308_s1 = inlined_call_operand.vmem [shape: f32[128,32], index: 1, kind: input, shape index: {}]   ;;  %s4309_s2 = inlined_call_operand.vmem [shape: f32[32,256], index: 2, kind: input, shape index: {}]   ;;  %s4310_s4 = inlined_call_operand.vmem [shape: f32[32,256], index: 4, kind: input, shape index: {}]   ;;  %s4311_s6 = inlined_call_operand.vmem [shape: f32[64,256], index: 6, kind: input, shape index: {}]   ;;  %s4312_s3 = inlined_call_operand.vmem [shape: f32[1,256], index: 3, kind: input, shape index: {}]   ;;  %s4313_s5 = inlined_call_operand.vmem [shape: f32[1,256], index: 5, kind: input, shape index: {}]   ;;  %s4314_s7 = inlined_call_operand.vmem [shape: f32[64,128], index: 7, kind: input, shape index: {}]   ;;  %s4315_s8 = inlined_call_operand.vmem [shape: f32[32,128], index: 8, kind: input, shape index: {}]   ;;  %s4316_s9 = inlined_call_operand.vmem [shape: f32[1,128], index: 9, kind: input, shape index: {}]   ;;  %s4317_s10 = inlined_call_operand.vmem [shape: f32[64,128], index: 10, kind: input, shape index: {}]   ;;  %s4318_s11 = inlined_call_operand.vmem [shape: f32[1,128], index: 11, kind: input, shape index: {}]   ;;  %s4319_s12 = inlined_call_operand.vmem [shape: f32[64,128], index: 12, kind: input, shape index: {}]   ;;  %s4320_s13 = inlined_call_operand.vmem [shape: f32[1,128], index: 13, kind: input, shape index: {}]   ;;  %s4321_s14 = inlined_call_operand.vmem [shape: f32[8,128], index: 14, kind: output, shape index: {}]  }
   0x1   :  { %3357 = vset.pattern.permute.xlu1 %v3526_v0  ;;  %3356 = vset.pattern.permute.xlu0 %v3526_v0  ;;  %v49_v1 = vld [vmem:[%s4307_s0 + $0x10] sm:$0xff]  ;;  %v47_v2 = vld [vmem:[%s4307_s0] sm:$0xff]  ;;  %v50_v3 = vld [vmem:[%s4307_s0 + $0x18] sm:$0xff]  ;;  %vm246_vm8 = vcmask 261120   ;;  %vm535_vm9 = vcmask 523264   ;;  %vm3531_vm11 = vmmov 0  }
   0x2   :  { %64 = vperm.xlu1 %3357, %v49_v1   ;;  %58 = vperm.xlu0 %3356, %v47_v2   ;;  %v48_v4 = vld [vmem:[%s4307_s0 + $0x8] sm:$0xff]  ;;  %v105_v5 = vld [vmem:[%s4308_s1] sm:$0xff]  ;;  %v107_v7 = vld [vmem:[%s4308_s1 + $0x10] sm:$0xff]  ;;  %v3705_v46 = vand.u32 127, %v55_v45 }
   0x3   :  { %v106_v6 = vld [vmem:[%s4308_s1 + $0x8] sm:$0xff]  ;;  %v108_v8 = vld [vmem:[%s4308_s1 + $0x18] sm:$0xff]  ;;  %v109_v11 = vld [vmem:[%s4308_s1 + $0x20] sm:$0xff]  ;;  %359 = vmatprep.mubr.f32.mxu1 %v3528_v56 }
   0x4   :  { %v3017_v9 = vpack.c.bf16 %v106_v6, %v105_v5  ;;  %v3021_v10 = vpack.c.bf16 %v108_v8, %v107_v7  ;;  %v110_v12 = vld [vmem:[%s4308_s1 + $0x28] sm:$0xff]  ;;  %v51_v14 = vld [vmem:[%s4307_s0 + $0x20] sm:$0xff]  ;;  %v111_v16 = vld [vmem:[%s4308_s1 + $0x30] sm:$0xff]  ;;  %vm1398_vm10 = vcmp.lt.s32.totalorder %v3705_v46, 32 }
   0x5   :  { %v52_v13 = vld [vmem:[%s4307_s0 + $0x28] sm:$0xff]  ;;  %v3025_v15 = vpack.c.bf16 %v110_v12, %v109_v11  ;;  %v112_v17 = vld [vmem:[%s4308_s1 + $0x38] sm:$0xff]  ;;  %v53_v19 = vld [vmem:[%s4307_s0 + $0x30] sm:$0xff] }
   0x6   :  { %67 = vperm.xlu1 %3357, %v50_v3   ;;  %61 = vperm.xlu0 %3356, %v48_v4   ;;  %v54_v18 = vld [vmem:[%s4307_s0 + $0x38] sm:$0xff]  ;;  %v3029_v20 = vpack.c.bf16 %v112_v17, %v111_v16  ;;  %v113_v21 = vld [vmem:[%s4308_s1 + $0x40] sm:$0xff]  ;;  %v114_v22 = vld [vmem:[%s4308_s1 + $0x48] sm:$0xff] }
   0x7   :  { %3018 = vmatprep.subr.bf16.mxu0 %v3017_v9  ;;  %v3033_v23 = vpack.c.bf16 %v114_v22, %v113_v21  ;;  %v115_v24 = vld [vmem:[%s4308_s1 + $0x50] sm:$0xff]  ;;  %v116_v25 = vld [vmem:[%s4308_s1 + $0x58] sm:$0xff]  ;;  %v227_v26 = vld [vmem:[%s4309_s2 + $0x8] sm:$0xff] }
   0x8   :  { %3020 = vmatpush3.bf16.msra.mxu0 %v3017_v9  ;;  %v229_v27 = vld [vmem:[%s4309_s2 + $0x18] sm:$0xff]  ;;  %v226_v28 = vld [vmem:[%s4309_s2] sm:$0xff]  ;;  %v3037_v29 = vpack.c.bf16 %v116_v25, %v115_v24  ;;  %v228_v31 = vld [vmem:[%s4309_s2 + $0x10] sm:$0xff] }
   0x9   :  { %3022 = vmatprep.subr.bf16.mxu0 %v3021_v10  ;;  %v3049_v30 = vpack.c.bf16 %v229_v27, %v227_v26  ;;  %v231_v32 = vld [vmem:[%s4309_s2 + $0x28] sm:$0xff]  ;;  %v233_v33 = vld [vmem:[%s4309_s2 + $0x38] sm:$0xff]  ;;  %v117_v34 = vld [vmem:[%s4308_s1 + $0x60] sm:$0xff]  ;;  %v3051_v36 = vpack.c.bf16 %v228_v31, %v226_v28 }
   0xa   :  { %73 = vperm.xlu1 %3357, %v52_v13   ;;  %70 = vperm.xlu0 %3356, %v51_v14   ;;  %v118_v35 = vld [vmem:[%s4308_s1 + $0x68] sm:$0xff]  ;;  %v3053_v37 = vpack.c.bf16 %v233_v33, %v231_v32  ;;  %v230_v38 = vld [vmem:[%s4309_s2 + $0x20] sm:$0xff]  ;;  %v232_v39 = vld [vmem:[%s4309_s2 + $0x30] sm:$0xff] }
   0xb   :  { %3281 = vmatprep.subr.bf16.mxu1 %v3049_v30  ;;  %v3041_v40 = vpack.c.bf16 %v118_v35, %v117_v34  ;;  %v119_v41 = vld [vmem:[%s4308_s1 + $0x70] sm:$0xff]  ;;  %v120_v42 = vld [vmem:[%s4308_s1 + $0x78] sm:$0xff]  ;;  %v3055_v43 = vpack.c.bf16 %v232_v39, %v230_v38  ;;  %v385_v57 = vld [vmem:[%s4310_s4 + $0x8] sm:$0xff] }
   0xc   :  { %3024 = vmatpush3.bf16.msra.mxu0 %v3021_v10  ;;  %3283 = vmatpush1.bf16.msra.mxu1 %v3051_v36  ;;  %v3045_v44 = vpack.c.bf16 %v120_v42, %v119_v41  ;;  %v387_v58 = vld [vmem:[%s4310_s4 + $0x18] sm:$0xff]  ;;  %v384_v63 = vld [vmem:[%s4310_s4] sm:$0xff]  ;;  %v386_v0 = vld [vmem:[%s4310_s4 + $0x10] sm:$0xff] }
   0xd   :  { %3026 = vmatprep.subr.bf16.mxu0 %v3025_v15  ;;  %3282 = vmatprep.subr.bf16.mxu1 %v3053_v37  ;;  %v3057_v59 = vpack.c.bf16 %v387_v58, %v385_v57  ;;  %v389_v2 = vld [vmem:[%s4310_s4 + $0x28] sm:$0xff]  ;;  %v391_v3 = vld [vmem:[%s4310_s4 + $0x38] sm:$0xff]  ;;  %v3059_v4 = vpack.c.bf16 %v386_v0, %v384_v63  ;;  %v388_v7 = vld [vmem:[%s4310_s4 + $0x20] sm:$0xff] }
   0xe   :  { %79 = vperm.xlu1 %3357, %v54_v18   ;;  %76 = vperm.xlu0 %3356, %v53_v19   ;;  %v3061_v6 = vpack.c.bf16 %v391_v3, %v389_v2  ;;  %v390_v8 = vld [vmem:[%s4310_s4 + $0x30] sm:$0xff]  ;;  %v520_v10 = vld [vmem:[%s4311_s6 + $0x8] sm:$0xff]  ;;  %v522_v11 = vld [vmem:[%s4311_s6 + $0x18] sm:$0xff] }
   0xf   :  { %v3063_v12 = vpack.c.bf16 %v390_v8, %v388_v7  ;;  %v3759_v14 = vpack.c.bf16 %v522_v11, %v520_v10  ;;  %v519_v16 = vld [vmem:[%s4311_s6] sm:$0xff]  ;;  %v521_v17 = vld [vmem:[%s4311_s6 + $0x10] sm:$0xff]  ;;  %v524_v18 = vld [vmem:[%s4311_s6 + $0x28] sm:$0xff] }
  0x10   :  { %3028 = vmatpush3.bf16.msra.mxu0 %v3025_v15  ;;  %3284 = vmatpush1.bf16.msra.mxu1 %v3055_v43  ;;  %v526_v19 = vld [vmem:[%s4311_s6 + $0x38] sm:$0xff]  ;;  %v523_v22 = vld [vmem:[%s4311_s6 + $0x20] sm:$0xff]  ;;  %v528_v24 = vld [vmem:[%s4311_s6 + $0x48] sm:$0xff] }
  0x11   :  { %3030 = vmatprep.subr.bf16.mxu0 %v3029_v20  ;;  %3058 = vmatprep.subr.bf16.mxu1 %v3057_v59  ;;  %v3785_v21 = vpack.c.bf16 %v526_v19, %v524_v18  ;;  %v530_v25 = vld [vmem:[%s4311_s6 + $0x58] sm:$0xff]  ;;  %v527_v28 = vld [vmem:[%s4311_s6 + $0x40] sm:$0xff]  ;;  %v533_v35 = vld [vmem:[%s4311_s6 + $0x70] sm:$0xff] }
  0x12   :  { %v3805_v27 = vpack.c.bf16 %v530_v25, %v528_v24  ;;  %v534_v31 = vld [vmem:[%s4311_s6 + $0x78] sm:$0xff]  ;;  %v531_v34 = vld [vmem:[%s4311_s6 + $0x60] sm:$0xff] }
  0x14   :  { %3032 = vmatpush3.bf16.msra.mxu0 %v3029_v20  ;;  %v3783_v20 = vpack.c.bf16 %v521_v17, %v519_v16 }
  0x15   :  { %3034 = vmatprep.subr.bf16.mxu0 %v3033_v23 }
  0x18   :  { %3036 = vmatpush3.bf16.msra.mxu0 %v3033_v23  ;;  %v525_v23 = vld [vmem:[%s4311_s6 + $0x30] sm:$0xff] }
  0x19   :  { %3038 = vmatprep.subr.bf16.mxu0 %v3037_v29  ;;  %v3802_v26 = vpack.c.bf16 %v525_v23, %v523_v22 }
  0x1c   :  { %3040 = vmatpush3.bf16.msra.mxu0 %v3037_v29  ;;  %v529_v29 = vld [vmem:[%s4311_s6 + $0x50] sm:$0xff] }
  0x1d   :  { %3042 = vmatprep.subr.bf16.mxu0 %v3041_v40  ;;  %v3822_v32 = vpack.c.bf16 %v529_v29, %v527_v28 }
  0x20   :  { %3044 = vmatpush3.bf16.msra.mxu0 %v3041_v40 }
  0x21   :  { %3046 = vmatprep.subr.bf16.mxu0 %v3045_v44 }
  0x24   :  { %3048 = vmatpush3.bf16.msra.mxu0 %v3045_v44 }
  0x25   :  { %3050 = vmatprep.subr.bf16.mxu0 %v3049_v30  ;;  %v532_v30 = vld [vmem:[%s4311_s6 + $0x68] sm:$0xff] }
  0x26   :  { %v3825_v33 = vpack.c.bf16 %v534_v31, %v532_v30 }
  0x81   :  { %v65_v47 = vpop.permute.xlu1 %64  ;;  %v59_v48 = vpop.permute.xlu0 %58 }
  0x82   :  { %vm81_vm0 = vcmp.eq.s32.totalorder %v3705_v46, %v59_v48  ;;  %vm83_vm1 = vcmp.eq.s32.totalorder %v3705_v46, %v65_v47  ;;  %v237_v47 = vshrl.u32 %v55_v45, 7 }
  0x83   :  { %2848 = vmatprep.mubr.msk.f32.mxu0 %vm81_vm0, %v3527_v49 }
  0x84   :  { %v238_v48 = vsub.s32 0, %v237_v47 }
  0x85   :  { %v68_v50 = vpop.permute.xlu1 %67  ;;  %v62_v51 = vpop.permute.xlu0 %61 }
  0x86   :  { %vm82_vm2 = vcmp.eq.s32.totalorder %v3705_v46, %v62_v51  ;;  %vm84_vm3 = vcmp.eq.s32.totalorder %v3705_v46, %v68_v50  ;;  %v242_v50 = vsub.s32 1, %v237_v47 }
  0x87   :  { %2849 = vmatmul.mubr.msk.f32.vlgmr.msra.gmra.mrb[0].mxu0 %vm82_vm2, %v3527_v49 }
  0x88   :  { %2851 = vmatprep.mubr.msk.f32.mxu0 %vm83_vm1, %v3527_v49  ;;  %3052 = vmatpush1.bf16.msra.mxu0 %v3051_v36  ;;  %v3836_v36 = vpack.c.bf16 %v533_v35, %v531_v34 }
  0x89   :  { %v74_v52 = vpop.permute.xlu1 %73  ;;  %v71_v53 = vpop.permute.xlu0 %70  ;;  %3054 = vmatprep.subr.bf16.mxu0 %v3053_v37 }
  0x8a   :  { %vm85_vm4 = vcmp.eq.s32.totalorder %v3705_v46, %v71_v53  ;;  %vm86_vm5 = vcmp.eq.s32.totalorder %v3705_v46, %v74_v52  ;;  %v392_v53 = vld [vmem:[%s4313_s5] sm:$0x3] }
  0x8b   :  { %2852 = vmatmul.mubr.msk.f32.gmra.mrb[2].mxu0 %vm84_vm3, %v3527_v49  ;;  %v3890_v57 = vrot.slane %v392_v53, %v242_v50 }
  0x8c   :  { %2854 = vmatprep.mubr.msk.f32.mxu0 %vm85_vm4, %v3527_v49  ;;  %3056 = vmatpush1.bf16.msra.mxu0 %v3055_v43 }
  0x8d   :  { %v77_v54 = vpop.permute.xlu0 %76  ;;  %v80_v55 = vpop.permute.xlu1 %79 }
  0x8e   :  { %vm87_vm6 = vcmp.eq.s32.totalorder %v3705_v46, %v77_v54  ;;  %vm88_vm7 = vcmp.eq.s32.totalorder %v3705_v46, %v80_v55  ;;  %v3887_v55 = vrot.slane %v392_v53, %v238_v48  ;;  %v2687_v46 = vld [vmem:[%s4316_s9] ss:$0 sm:$0xff]  ;;  %s3532_s9 = smov 32  }
  0x8f   :  { %2855 = vmatmul.mubr.msk.f32.gmra.mrb[4].mxu0 %vm86_vm5, %v3527_v49 }
  0x90   :  { %2857 = vmatprep.mubr.msk.f32.mxu0 %vm87_vm6, %v3527_v49 }
  0x93   :  { %2858 = vmatmul.mubr.msk.f32.gmra.mrb[6].mxu0 %vm88_vm7, %v3527_v49  ;;  %v234_v49 = vld [vmem:[%s4312_s3] sm:$0x3]  ;;  %s3529_s3 = smov 64  }
  0x94   :  { %335 = vmatprep.mubr.f32.mxu0 %v3528_v56  ;;  %v3879_v51 = vrot.slane %v234_v49, %v238_v48  ;;  %v3881_v52 = vrot.slane %v234_v49, %v242_v50 }
 0x15a   :  { %v2850_v60 = vpop.f32.mrb[0].mxu0 }
 0x15b   :  { %v187_v61 = vpop.f32.mrb[1].mxu0 }
 0x15c   :  { %2648 = vmatmul.mubr.msk.f32.vlgmr.msra.gmra.mrb[8].mxu0 %vm246_vm8, %v187_v61 }
 0x15d   :  { %341 = vmatprep.mubr.f32.mxu0 %v3528_v56 }
 0x15e   :  { %v3725_v62 = vpop.f32.mrb[2].mxu0 }
 0x15f   :  { %v197_v1 = vpop.f32.mrb[3].mxu0 }
 0x160   :  { %2649 = vmatmul.mubr.msk.f32.gmra.mrb[10].mxu0 %vm246_vm8, %v2850_v60 }
 0x161   :  { %347 = vmatprep.mubr.f32.mxu0 %v3528_v56 }
 0x162   :  { %v3741_v5 = vpop.f32.mrb[4].mxu0 }
 0x163   :  { %v207_v9 = vpop.f32.mrb[5].mxu0 }
 0x164   :  { %2650 = vmatmul.mubr.msk.f32.gmra.mrb[12].mxu0 %vm246_vm8, %v197_v1  ;;  %2652 = vmatmul.mubr.msk.f32.vlgmr.msra.gmra.mrb[0].mxu1 %vm246_vm8, %v207_v9 }
 0x165   :  { %3060 = vmatpush1.bf16.msra.mxu1 %v3059_v4  ;;  %353 = vmatprep.mubr.f32.mxu0 %v3528_v56 }
 0x166   :  { %v2859_v13 = vpop.f32.mrb[6].mxu0  ;;  %365 = vmatprep.mubr.f32.mxu1 %v3528_v56  ;;  %3062 = vmatprep.subr.bf16.mxu1 %v3061_v6 }
 0x167   :  { %v217_v15 = vpop.f32.mrb[7].mxu0 }
 0x168   :  { %2651 = vmatmul.mubr.msk.f32.gmra.mrb[14].mxu0 %vm246_vm8, %v3725_v62  ;;  %2653 = vmatmul.mubr.msk.f32.gmra.mrb[2].mxu1 %vm246_vm8, %v3741_v5 }
 0x169   :  { %371 = vmatprep.mubr.f32.mxu1 %v3528_v56  ;;  %3064 = vmatpush1.bf16.msra.mxu1 %v3063_v12 }
 0x16a   :  { %3066 = vmatprep.subr.bf16.mxu1 %v3759_v14 }
 0x16c   :  { %2654 = vmatmul.mubr.msk.f32.gmra.mrb[4].mxu1 %vm246_vm8, %v217_v15 }
 0x16d   :  { %377 = vmatprep.mubr.f32.mxu1 %v3528_v56 }
 0x170   :  { %2655 = vmatmul.mubr.msk.f32.gmra.mrb[6].mxu1 %vm246_vm8, %v2859_v13 }
 0x171   :  { %468 = vmatprep.mubr.f32.mxu1 %v3528_v56 }
 0x178   :  { %2656 = vmatmul.mubr.msk.f32.vlgmr.msra.gmra.mrb[6].mxu1 %vm246_vm8, %v187_v61 }
 0x179   :  { %3068 = vmatpush1.bf16.msra.mxu1 %v3783_v20  ;;  %474 = vmatprep.mubr.f32.mxu1 %v3528_v56 }
 0x17a   :  { %3070 = vmatprep.subr.bf16.mxu1 %v3785_v21 }
 0x17c   :  { %2657 = vmatmul.mubr.msk.f32.gmra.mrb[4].mxu1 %vm246_vm8, %v2850_v60 }
 0x17d   :  { %480 = vmatprep.mubr.f32.mxu1 %v3528_v56  ;;  %3072 = vmatpush1.bf16.msra.mxu1 %v3802_v26 }
 0x17e   :  { %3074 = vmatprep.subr.bf16.mxu1 %v3805_v27 }
 0x180   :  { %2658 = vmatmul.mubr.msk.f32.gmra.mrb[2].mxu1 %vm246_vm8, %v197_v1 }
 0x181   :  { %486 = vmatprep.mubr.f32.mxu1 %v3528_v56  ;;  %3076 = vmatpush1.bf16.msra.mxu1 %v3822_v32 }
 0x182   :  { %3078 = vmatprep.subr.bf16.mxu1 %v3825_v33 }
 0x184   :  { %2659 = vmatmul.mubr.msk.f32.gmra.mrb[0].mxu1 %vm246_vm8, %v3725_v62 }
 0x185   :  { %492 = vmatprep.mubr.f32.mxu1 %v3528_v56  ;;  %3080 = vmatpush1.bf16.msra.mxu1 %v3836_v36 }
 0x186   :  { %3082 = vmatprep.subr.bf16.mxu1 %v3759_v14 }
 0x188   :  { %2660 = vmatmul.mubr.msk.f32.gmra.mrb[8].mxu1 %vm246_vm8, %v207_v9 }
 0x189   :  { %498 = vmatprep.mubr.f32.mxu1 %v3528_v56 }
 0x18c   :  { %2661 = vmatmul.mubr.msk.f32.gmra.mrb[10].mxu1 %vm246_vm8, %v3741_v5 }
 0x18d   :  { %504 = vmatprep.mubr.f32.mxu1 %v3528_v56 }
 0x190   :  { %2662 = vmatmul.mubr.msk.f32.gmra.mrb[12].mxu1 %vm246_vm8, %v217_v15 }
 0x191   :  { %510 = vmatprep.mubr.f32.mxu1 %v3528_v56 }
 0x194   :  { %2663 = vmatmul.mubr.msk.f32.gmra.mrb[14].mxu1 %vm246_vm8, %v2859_v13 }
 0x195   :  { %603 = vmatprep.mubr.f32.mxu1 %v3528_v56 }
 0x19c   :  { %604 = vmatmul.mubr.f32.vlgmr.msra.gmra.mrb[14].mxu1 %v3528_v56 }
 0x19d   :  { %3084 = vmatpush1.bf16.msra.mxu1 %v3783_v20  ;;  %711 = vmatprep.mubr.f32.mxu1 %v3528_v56 }
 0x19e   :  { %3086 = vmatprep.subr.bf16.mxu1 %v3785_v21 }
 0x1a1   :  { %3088 = vmatpush1.bf16.msra.mxu1 %v3802_v26 }
 0x1a2   :  { %3090 = vmatprep.subr.bf16.mxu1 %v3805_v27 }
 0x1a5   :  { %3092 = vmatpush1.bf16.msra.mxu1 %v3822_v32 }
 0x1a6   :  { %3094 = vmatprep.subr.bf16.mxu1 %v3825_v33 }
 0x1a9   :  { %3096 = vmatpush1.bf16.msra.mxu1 %v3836_v36 }
 0x1aa   :  { %3098 = vmatprep.subr.bf16.mxu1 %v3759_v14 }
 0x22f   :  { %v337_v37 = vpop.f32.mrb[8].mxu0 }
 0x230   :  { %v339_v38 = vpop.f32.mrb[9].mxu0  ;;  %v338_v54 = vadd.f32 %v337_v37, %v3879_v51 }
 0x231   :  { %v340_v45 = vadd.f32 %v339_v38, %v3881_v52 }
 0x232   :  { %v3286_v58 = vadd.f32 %v3887_v55, %v338_v54 }
 0x233   :  { %v3863_v39 = vpop.f32.mrb[10].mxu0  ;;  %v3289_v60 = vadd.f32 %v3890_v57, %v340_v45 }
 0x234   :  { %v3865_v40 = vpop.f32.mrb[11].mxu0  ;;  %v344_v18 = vadd.f32 %v3863_v39, %v3879_v51 }
 0x235   :  { %v346_v19 = vadd.f32 %v3865_v40, %v3881_v52 }
 0x236   :  { %v3292_v22 = vadd.f32 %v3887_v55, %v344_v18 }
 0x237   :  { %v3867_v41 = vpop.f32.mrb[12].mxu0  ;;  %v3295_v24 = vadd.f32 %v3890_v57, %v346_v19 }
 0x238   :  { %v3869_v42 = vpop.f32.mrb[13].mxu0 }
 0x23b   :  { %v3871_v43 = vpop.f32.mrb[14].mxu0 }
 0x23c   :  { %v3873_v44 = vpop.f32.mrb[15].mxu0 }
 0x26f   :  { %v605_v59 = vpop.f32.mrb[14].mxu1 }
 0x270   :  { %v3287_v61 = vadd.f32 %v3286_v58, %v605_v59  ;;  %v607_v62 = vpop.f32.mrb[15].mxu1 }
 0x271   :  { %v3290_v63 = vadd.f32 %v3289_v60, %v607_v62  ;;  %v350_v60 = vadd.f32 %v3867_v41, %v3879_v51 }
 0x272   :  { %v2664_v1 = vmul.f32 -1.442695, %v3287_v61  ;;  %v352_v61 = vadd.f32 %v3869_v42, %v3881_v52 }
 0x273   :  { %3358 = vtanh.f32 %v3290_v63  ;;  %v2665_v11 = vmul.f32 -1.442695, %v3290_v63  ;;  %v3298_v62 = vadd.f32 %v3887_v55, %v350_v60 }
 0x274   :  { %3360 = vpow2.f32 %v2664_v1 }
 0x27d   :  { %v3359_v0 = vpop.eup %3358 }
 0x27e   :  { %627 = vrot.lane.b32.xlu0 %v3359_v0, %s3529_s3  ;;  %v3361_v2 = vpop.eup %3360  ;;  %v3301_v0 = vadd.f32 %v3890_v57, %v352_v61 }
 0x27f   :  { %v618_v3 = vadd.f32 1.0, %v3361_v2 }
 0x281   :  { %3362 = vrcp.f32 %v618_v3 }
 0x28b   :  { %v3363_v4 = vpop.eup %3362 }
 0x28c   :  { %v625_v7 = vmul.f32 0.0, %v3363_v4 }
 0x2f0   :  { %v628_v5 = vpop.permute.xlu0 %627 }
 0x2f1   :  { %v630_v6 = vmul.f32 %v3363_v4, %v628_v5 }
 0x2f3   :  { %632 = vrot.lane.b32.xlu1 %v630_v6, %s3529_s3 }
 0x365   :  { %v633_v8 = vpop.permute.xlu1 %632 }
 0x366   :  { %v635_v9 = vadd.f32 %v633_v8, %v625_v7 }
 0x368   :  { %3364 = vtanh.f32 %v635_v9 }
 0x369   :  { %3366 = vpow2.f32 %v2665_v11 }
 0x372   :  { %v3365_v10 = vpop.eup %3364 }
 0x373   :  { %638 = vrot.lane.b32.xlu0 %v3365_v10, %s3529_s3  ;;  %v3367_v12 = vpop.eup %3366 }
 0x374   :  { %v619_v13 = vadd.f32 1.0, %v3367_v12 }
 0x376   :  { %3368 = vrcp.f32 %v619_v13 }
 0x380   :  { %v3369_v15 = vpop.eup %3368 }
 0x3e5   :  { %v639_v16 = vpop.permute.xlu0 %638 }
 0x3e6   :  { %v3897_v17 = vmul.f32 %v3369_v15, %v639_v16 }
 0x3e8   :  { %2666 = vmatmul.mubr.msk.f32.vlgmr.msra.gmra.mrb[12].mxu1 %vm535_vm9, %v3897_v17 }
 0x3e9   :  { %3100 = vmatpush1.bf16.msra.mxu1 %v3783_v20  ;;  %819 = vmatprep.mubr.f32.mxu1 %v3528_v56 }
 0x3ea   :  { %3102 = vmatprep.subr.bf16.mxu1 %v3785_v21 }
 0x3ed   :  { %3104 = vmatpush1.bf16.msra.mxu1 %v3802_v26 }
 0x3ee   :  { %3106 = vmatprep.subr.bf16.mxu1 %v3805_v27 }
 0x3f1   :  { %3108 = vmatpush1.bf16.msra.mxu1 %v3822_v32 }
 0x3f2   :  { %3110 = vmatprep.subr.bf16.mxu1 %v3825_v33 }
 0x3f5   :  { %3112 = vmatpush1.bf16.msra.mxu1 %v3836_v36 }
 0x3f6   :  { %3114 = vmatprep.subr.bf16.mxu1 %v3759_v14 }
 0x4bb   :  { %v713_v23 = vpop.f32.mrb[12].mxu1 }
 0x4bc   :  { %v3293_v25 = vadd.f32 %v3292_v22, %v713_v23  ;;  %v715_v28 = vpop.f32.mrb[13].mxu1  ;;  %v356_v23 = vadd.f32 %v3871_v43, %v3879_v51 }
 0x4bd   :  { %v3296_v29 = vadd.f32 %v3295_v24, %v715_v28  ;;  %v358_v24 = vadd.f32 %v3873_v44, %v3881_v52 }
 0x4be   :  { %v2667_v31 = vmul.f32 -1.442695, %v3293_v25  ;;  %v3304_v25 = vadd.f32 %v3887_v55, %v356_v23 }
 0x4bf   :  { %3370 = vtanh.f32 %v3296_v29  ;;  %v2668_v50 = vmul.f32 -1.442695, %v3296_v29  ;;  %v3307_v29 = vadd.f32 %v3890_v57, %v358_v24 }
 0x4c0   :  { %3372 = vpow2.f32 %v2667_v31 }
 0x4c9   :  { %v3371_v30 = vpop.eup %3370 }
 0x4ca   :  { %735 = vrot.lane.b32.xlu1 %v3371_v30, %s3529_s3  ;;  %v3373_v34 = vpop.eup %3372 }
 0x4cb   :  { %v726_v35 = vadd.f32 1.0, %v3373_v34 }
 0x4cd   :  { %3374 = vrcp.f32 %v726_v35 }
 0x4d7   :  { %v3375_v37 = vpop.eup %3374 }
 0x4d8   :  { %v733_v40 = vmul.f32 %v3375_v37, %v635_v9 }
 0x53c   :  { %v736_v38 = vpop.permute.xlu1 %735 }
 0x53d   :  { %v738_v39 = vmul.f32 %v3375_v37, %v736_v38 }
 0x53f   :  { %740 = vrot.lane.b32.xlu0 %v738_v39, %s3529_s3 }
 0x5b1   :  { %v741_v47 = vpop.permute.xlu0 %740 }
 0x5b2   :  { %v743_v48 = vadd.f32 %v741_v47, %v733_v40 }
 0x5b4   :  { %3376 = vtanh.f32 %v743_v48 }
 0x5b5   :  { %3378 = vpow2.f32 %v2668_v50 }
 0x5be   :  { %v3377_v49 = vpop.eup %3376 }
 0x5bf   :  { %746 = vrot.lane.b32.xlu1 %v3377_v49, %s3529_s3  ;;  %v3379_v53 = vpop.eup %3378 }
 0x5c0   :  { %v727_v54 = vadd.f32 1.0, %v3379_v53 }
 0x5c2   :  { %3380 = vrcp.f32 %v727_v54 }
 0x5cc   :  { %v3381_v45 = vpop.eup %3380 }
 0x631   :  { %v747_v58 = vpop.permute.xlu1 %746 }
 0x632   :  { %v3919_v59 = vmul.f32 %v3381_v45, %v747_v58 }
 0x634   :  { %2669 = vmatmul.mubr.msk.f32.vlgmr.msra.gmra.mrb[10].mxu1 %vm535_vm9, %v3919_v59 }
 0x635   :  { %3116 = vmatpush1.bf16.msra.mxu1 %v3783_v20  ;;  %927 = vmatprep.mubr.f32.mxu1 %v3528_v56 }
 0x636   :  { %3118 = vmatprep.subr.bf16.mxu1 %v3785_v21 }
 0x639   :  { %3120 = vmatpush1.bf16.msra.mxu1 %v3802_v26 }
 0x63a   :  { %3122 = vmatprep.subr.bf16.mxu1 %v3805_v27 }
 0x63d   :  { %3124 = vmatpush1.bf16.msra.mxu1 %v3822_v32 }
 0x63e   :  { %3126 = vmatprep.subr.bf16.mxu1 %v3825_v33 }
 0x641   :  { %3128 = vmatpush1.bf16.msra.mxu1 %v3836_v36 }
 0x642   :  { %3130 = vmatprep.subr.bf16.mxu1 %v3759_v14 }
 0x707   :  { %v821_v63 = vpop.f32.mrb[10].mxu1 }
 0x708   :  { %v3299_v1 = vadd.f32 %v3298_v62, %v821_v63  ;;  %v823_v2 = vpop.f32.mrb[11].mxu1  ;;  %v3978_v62 = vadd.f32 %v3890_v57, %v3881_v52 }
 0x709   :  { %v3302_v3 = vadd.f32 %v3301_v0, %v823_v2 }
 0x70a   :  { %v2670_v5 = vmul.f32 -1.442695, %v3299_v1 }
 0x70b   :  { %3382 = vtanh.f32 %v3302_v3  ;;  %v2671_v13 = vmul.f32 -1.442695, %v3302_v3  ;;  %v3984_v3 = vadd.f32 %v3887_v55, %v3879_v51 }
 0x70c   :  { %3384 = vpow2.f32 %v2670_v5 }
 0x715   :  { %v3383_v4 = vpop.eup %3382 }
 0x716   :  { %843 = vrot.lane.b32.xlu0 %v3383_v4, %s3529_s3  ;;  %v3385_v6 = vpop.eup %3384 }
 0x717   :  { %v834_v7 = vadd.f32 1.0, %v3385_v6 }
 0x719   :  { %3386 = vrcp.f32 %v834_v7 }
 0x723   :  { %v3387_v41 = vpop.eup %3386 }
 0x724   :  { %v841_v9 = vmul.f32 %v3387_v41, %v743_v48 }
 0x788   :  { %v844_v8 = vpop.permute.xlu0 %843 }
 0x789   :  { %v846_v42 = vmul.f32 %v3387_v41, %v844_v8 }
 0x78b   :  { %848 = vrot.lane.b32.xlu1 %v846_v42, %s3529_s3 }
 0x7fd   :  { %v849_v10 = vpop.permute.xlu1 %848 }
 0x7fe   :  { %v851_v11 = vadd.f32 %v849_v10, %v841_v9 }
 0x800   :  { %3388 = vtanh.f32 %v851_v11 }
 0x801   :  { %3390 = vpow2.f32 %v2671_v13 }
 0x80a   :  { %v3389_v12 = vpop.eup %3388 }
 0x80b   :  { %854 = vrot.lane.b32.xlu0 %v3389_v12, %s3529_s3  ;;  %v3391_v15 = vpop.eup %3390 }
 0x80c   :  { %v835_v16 = vadd.f32 1.0, %v3391_v15 }
 0x80e   :  { %3392 = vrcp.f32 %v835_v16 }
 0x818   :  { %v3393_v18 = vpop.eup %3392 }
 0x87d   :  { %v855_v19 = vpop.permute.xlu0 %854 }
 0x87e   :  { %v3941_v22 = vmul.f32 %v3393_v18, %v855_v19 }
 0x880   :  { %2672 = vmatmul.mubr.msk.f32.vlgmr.msra.gmra.mrb[8].mxu1 %vm535_vm9, %v3941_v22 }
 0x881   :  { %3132 = vmatpush1.bf16.msra.mxu1 %v3783_v20  ;;  %1035 = vmatprep.mubr.f32.mxu1 %v3528_v56 }
 0x882   :  { %3134 = vmatprep.subr.bf16.mxu1 %v3785_v21 }
 0x885   :  { %3136 = vmatpush1.bf16.msra.mxu1 %v3802_v26 }
 0x886   :  { %3138 = vmatprep.subr.bf16.mxu1 %v3805_v27 }
 0x889   :  { %3140 = vmatpush1.bf16.msra.mxu1 %v3822_v32 }
 0x88a   :  { %3142 = vmatprep.subr.bf16.mxu1 %v3825_v33 }
 0x88d   :  { %3144 = vmatpush1.bf16.msra.mxu1 %v3836_v36 }
 0x88e   :  { %3146 = vmatprep.subr.bf16.mxu1 %v3759_v14 }
 0x953   :  { %v929_v28 = vpop.f32.mrb[8].mxu1 }
 0x954   :  { %v3305_v30 = vadd.f32 %v3304_v25, %v929_v28  ;;  %v931_v31 = vpop.f32.mrb[9].mxu1 }
 0x955   :  { %v3308_v34 = vadd.f32 %v3307_v29, %v931_v31 }
 0x956   :  { %v2673_v37 = vmul.f32 -1.442695, %v3305_v30 }
 0x957   :  { %3394 = vtanh.f32 %v3308_v34  ;;  %v2674_v53 = vmul.f32 -1.442695, %v3308_v34 }
 0x958   :  { %3396 = vpow2.f32 %v2673_v37 }
 0x961   :  { %v3395_v35 = vpop.eup %3394 }
 0x962   :  { %951 = vrot.lane.b32.xlu1 %v3395_v35, %s3529_s3  ;;  %v3397_v38 = vpop.eup %3396 }
 0x963   :  { %v942_v39 = vadd.f32 1.0, %v3397_v38 }
 0x965   :  { %3398 = vrcp.f32 %v942_v39 }
 0x96f   :  { %v3399_v43 = vpop.eup %3398 }
 0x970   :  { %v949_v47 = vmul.f32 %v3399_v43, %v851_v11 }
 0x9d4   :  { %v952_v40 = vpop.permute.xlu1 %951 }
 0x9d5   :  { %v954_v44 = vmul.f32 %v3399_v43, %v952_v40 }
 0x9d7   :  { %956 = vrot.lane.b32.xlu0 %v954_v44, %s3529_s3 }
 0xa49   :  { %v957_v48 = vpop.permute.xlu0 %956 }
 0xa4a   :  { %v959_v49 = vadd.f32 %v957_v48, %v949_v47 }
 0xa4c   :  { %3400 = vtanh.f32 %v959_v49 }
 0xa4d   :  { %3402 = vpow2.f32 %v2674_v53 }
 0xa56   :  { %v3401_v50 = vpop.eup %3400 }
 0xa57   :  { %962 = vrot.lane.b32.xlu1 %v3401_v50, %s3529_s3  ;;  %v3403_v54 = vpop.eup %3402 }
 0xa58   :  { %v943_v45 = vadd.f32 1.0, %v3403_v54 }
 0xa5a   :  { %3404 = vrcp.f32 %v943_v45 }
 0xa64   :  { %v3405_v58 = vpop.eup %3404 }
 0xac9   :  { %v963_v60 = vpop.permute.xlu1 %962 }
 0xaca   :  { %v3963_v61 = vmul.f32 %v3405_v58, %v963_v60 }
 0xacc   :  { %2675 = vmatmul.mubr.msk.f32.vlgmr.msra.gmra.mrb[0].mxu1 %vm535_vm9, %v3963_v61 }
 0xacd   :  { %3148 = vmatpush1.bf16.msra.mxu1 %v3783_v20  ;;  %1143 = vmatprep.mubr.f32.mxu1 %v3528_v56 }
 0xace   :  { %3150 = vmatprep.subr.bf16.mxu1 %v3785_v21 }
 0xad1   :  { %3152 = vmatpush1.bf16.msra.mxu1 %v3802_v26 }
 0xad2   :  { %3154 = vmatprep.subr.bf16.mxu1 %v3805_v27 }
 0xad5   :  { %3156 = vmatpush1.bf16.msra.mxu1 %v3822_v32 }
 0xad6   :  { %3158 = vmatprep.subr.bf16.mxu1 %v3825_v33 }
 0xad9   :  { %3160 = vmatpush1.bf16.msra.mxu1 %v3836_v36 }
 0xada   :  { %3162 = vmatprep.subr.bf16.mxu1 %v3759_v14 }
 0xb9f   :  { %v1037_v63 = vpop.f32.mrb[0].mxu1 }
 0xba0   :  { %v1039_v0 = vpop.f32.mrb[1].mxu1  ;;  %v3310_v4 = vadd.f32 %v3984_v3, %v1037_v63 }
 0xba1   :  { %v3312_v1 = vadd.f32 %v3978_v62, %v1039_v0 }
 0xba2   :  { %v2676_v5 = vmul.f32 -1.442695, %v3310_v4 }
 0xba3   :  { %3406 = vtanh.f32 %v3312_v1  ;;  %v2677_v51 = vmul.f32 -1.442695, %v3312_v1 }
 0xba4   :  { %3408 = vpow2.f32 %v2676_v5 }
 0xbad   :  { %v3407_v2 = vpop.eup %3406 }
 0xbae   :  { %1059 = vrot.lane.b32.xlu0 %v3407_v2, %s3529_s3  ;;  %v3409_v6 = vpop.eup %3408 }
 0xbaf   :  { %v1050_v7 = vadd.f32 1.0, %v3409_v6 }
 0xbb1   :  { %3410 = vrcp.f32 %v1050_v7 }
 0xbbb   :  { %v3411_v52 = vpop.eup %3410 }
 0xbbc   :  { %v1057_v8 = vmul.f32 %v3411_v52, %v959_v49 }
 0xc20   :  { %v1060_v57 = vpop.permute.xlu0 %1059 }
 0xc21   :  { %v1062_v41 = vmul.f32 %v3411_v52, %v1060_v57 }
 0xc23   :  { %1064 = vrot.lane.b32.xlu1 %v1062_v41, %s3529_s3 }
 0xc95   :  { %v1065_v42 = vpop.permute.xlu1 %1064 }
 0xc96   :  { %v1067_v9 = vadd.f32 %v1065_v42, %v1057_v8 }
 0xc98   :  { %3412 = vtanh.f32 %v1067_v9 }
 0xc99   :  { %3414 = vpow2.f32 %v2677_v51 }
 0xca2   :  { %v3413_v10 = vpop.eup %3412 }
 0xca3   :  { %1070 = vrot.lane.b32.xlu0 %v3413_v10, %s3529_s3  ;;  %v3415_v55 = vpop.eup %3414 }
 0xca4   :  { %v1051_v11 = vadd.f32 1.0, %v3415_v55 }
 0xca6   :  { %3416 = vrcp.f32 %v1051_v11 }
 0xcb0   :  { %v3417_v12 = vpop.eup %3416 }
 0xd15   :  { %v1071_v13 = vpop.permute.xlu0 %1070 }
 0xd16   :  { %v3989_v15 = vmul.f32 %v3417_v12, %v1071_v13  ;;  %v1408_v12 = vld [vmem:[%s4314_s7 + $0x8] sm:$0xff] }
 0xd18   :  { %2678 = vmatmul.mubr.msk.f32.vlgmr.msra.gmra.mrb[2].mxu1 %vm535_vm9, %v3989_v15 }
 0xd19   :  { %3164 = vmatpush1.bf16.msra.mxu1 %v3783_v20  ;;  %1251 = vmatprep.mubr.f32.mxu1 %v3528_v56 }
 0xd1a   :  { %3166 = vmatprep.subr.bf16.mxu1 %v3785_v21 }
 0xd1d   :  { %3168 = vmatpush1.bf16.msra.mxu1 %v3802_v26 }
 0xd1e   :  { %3170 = vmatprep.subr.bf16.mxu1 %v3805_v27 }
 0xd21   :  { %3172 = vmatpush1.bf16.msra.mxu1 %v3822_v32 }
 0xd22   :  { %3174 = vmatprep.subr.bf16.mxu1 %v3825_v33 }
 0xd25   :  { %3176 = vmatpush1.bf16.msra.mxu1 %v3836_v36 }
 0xd26   :  { %3178 = vmatprep.subr.bf16.mxu1 %v3759_v14 }
 0xdeb   :  { %v1145_v16 = vpop.f32.mrb[2].mxu1 }
 0xdec   :  { %v1147_v18 = vpop.f32.mrb[3].mxu1  ;;  %v3314_v24 = vadd.f32 %v3984_v3, %v1145_v16  ;;  %v1410_v16 = vld [vmem:[%s4314_s7 + $0x18] sm:$0xff] }
 0xded   :  { %v3316_v19 = vadd.f32 %v3978_v62, %v1147_v18 }
 0xdee   :  { %v2679_v25 = vmul.f32 -1.442695, %v3314_v24 }
 0xdef   :  { %3418 = vtanh.f32 %v3316_v19  ;;  %v2680_v39 = vmul.f32 -1.442695, %v3316_v19  ;;  %v1411_v19 = vld [vmem:[%s4314_s7 + $0x20] sm:$0xff] }
 0xdf0   :  { %3420 = vpow2.f32 %v2679_v25  ;;  %v1413_v25 = vld [vmem:[%s4314_s7 + $0x30] sm:$0xff] }
 0xdf9   :  { %v3419_v23 = vpop.eup %3418 }
 0xdfa   :  { %1167 = vrot.lane.b32.xlu1 %v3419_v23, %s3529_s3  ;;  %v3421_v28 = vpop.eup %3420  ;;  %v1412_v23 = vld [vmem:[%s4314_s7 + $0x28] sm:$0xff] }
 0xdfb   :  { %v1158_v29 = vadd.f32 1.0, %v3421_v28  ;;  %v3201_v24 = vpack.c.bf16 %v1412_v23, %v1411_v19  ;;  %v1414_v28 = vld [vmem:[%s4314_s7 + $0x38] sm:$0xff] }
 0xdfd   :  { %3422 = vrcp.f32 %v1158_v29  ;;  %v3205_v29 = vpack.c.bf16 %v1414_v28, %v1413_v25 }
 0xe07   :  { %v3423_v30 = vpop.eup %3422 }
 0xe08   :  { %v1165_v14 = vmul.f32 %v3423_v30, %v1067_v9 }
 0xe6c   :  { %v1168_v31 = vpop.permute.xlu1 %1167 }
 0xe6d   :  { %v1170_v34 = vmul.f32 %v3423_v30, %v1168_v31 }
 0xe6f   :  { %1172 = vrot.lane.b32.xlu0 %v1170_v34, %s3529_s3 }
 0xee1   :  { %v1173_v35 = vpop.permute.xlu0 %1172 }
 0xee2   :  { %v1175_v37 = vadd.f32 %v1173_v35, %v1165_v14  ;;  %v3530_v14 = vmov 0.0|0.0  }
 0xee4   :  { %3424 = vtanh.f32 %v1175_v37 }
 0xee5   :  { %3426 = vpow2.f32 %v2680_v39 }
 0xeee   :  { %v3425_v38 = vpop.eup %3424 }
 0xeef   :  { %1178 = vrot.lane.b32.xlu1 %v3425_v38, %s3529_s3  ;;  %v3427_v43 = vpop.eup %3426 }
 0xef0   :  { %v1159_v40 = vadd.f32 1.0, %v3427_v43  ;;  %v1551_v43 = vld [vmem:[%s4315_s8] sm:$0xff] }
 0xef2   :  { %3428 = vrcp.f32 %v1159_v40  ;;  %v1552_v40 = vld [vmem:[%s4315_s8 + $0x8] sm:$0xff] }
 0xefc   :  { %v3429_v44 = vpop.eup %3428 }
 0xf61   :  { %v1179_v47 = vpop.permute.xlu1 %1178 }
 0xf62   :  { %v4007_v48 = vmul.f32 %v3429_v44, %v1179_v47 }
 0xf64   :  { %2681 = vmatmul.mubr.msk.f32.vlgmr.msra.gmra.mrb[4].mxu1 %vm535_vm9, %v4007_v48 }
 0xf65   :  { %3180 = vmatpush1.bf16.msra.mxu1 %v3783_v20  ;;  %1359 = vmatprep.mubr.f32.mxu1 %v3528_v56 }
 0xf66   :  { %3182 = vmatprep.subr.bf16.mxu1 %v3785_v21 }
 0xf69   :  { %3184 = vmatpush1.bf16.msra.mxu1 %v3802_v26 }
 0xf6a   :  { %3186 = vmatprep.subr.bf16.mxu1 %v3805_v27 }
 0xf6d   :  { %3188 = vmatpush1.bf16.msra.mxu1 %v3822_v32 }
 0xf6e   :  { %3190 = vmatprep.subr.bf16.mxu1 %v3825_v33 }
 0xf71   :  { %3192 = vmatpush1.bf16.msra.mxu1 %v3836_v36 }
0x1037   :  { %v1253_v49 = vpop.f32.mrb[4].mxu1 }
0x1038   :  { %v1255_v50 = vpop.f32.mrb[5].mxu1  ;;  %v3318_v21 = vadd.f32 %v3984_v3, %v1253_v49 }
0x1039   :  { %v3320_v53 = vadd.f32 %v3978_v62, %v1255_v50  ;;  %v4065_v50 = vpack.c.bf16 %v1552_v40, %v1551_v43 }
0x103a   :  { %v2682_v54 = vmul.f32 -1.442695, %v3318_v21  ;;  %v1554_v21 = vld [vmem:[%s4315_s8 + $0x18] sm:$0xff] }
0x103b   :  { %3430 = vtanh.f32 %v3320_v53  ;;  %v2683_v0 = vmul.f32 -1.442695, %v3320_v53 }
0x103c   :  { %3432 = vpow2.f32 %v2682_v54 }
0x1045   :  { %v3431_v20 = vpop.eup %3430 }
0x1046   :  { %1275 = vrot.lane.b32.xlu0 %v3431_v20, %s3529_s3  ;;  %v3433_v26 = vpop.eup %3432  ;;  %v1553_v20 = vld [vmem:[%s4315_s8 + $0x10] sm:$0xff] }
0x1047   :  { %v1266_v27 = vadd.f32 1.0, %v3433_v26  ;;  %v1401_v26 = vsel %vm1398_vm10, %v3941_v22, %v4007_v48 }
0x1049   :  { %3434 = vrcp.f32 %v1266_v27  ;;  %v4088_v27 = vpack.c.bf16 %v1554_v21, %v1553_v20 }
0x1053   :  { %v3435_v32 = vpop.eup %3434 }
0x1054   :  { %v1273_v36 = vmul.f32 %v3435_v32, %v1175_v37 }
0x10b8   :  { %v1276_v45 = vpop.permute.xlu0 %1275 }
0x10b9   :  { %v1278_v33 = vmul.f32 %v3435_v32, %v1276_v45  ;;  %v1402_v32 = vsel %vm1398_vm10, %v3963_v61, %v3989_v15  ;;  %v1403_v45 = vsel %vm1398_vm10, %v3989_v15, %v3963_v61 }
0x10bb   :  { %1280 = vrot.lane.b32.xlu1 %v1278_v33, %s3529_s3  ;;  %v1404_v33 = vsel %vm1398_vm10, %v4007_v48, %v3941_v22 }
0x112d   :  { %v1281_v58 = vpop.permute.xlu1 %1280 }
0x112e   :  { %v1283_v60 = vadd.f32 %v1281_v58, %v1273_v36 }
0x1130   :  { %3436 = vtanh.f32 %v1283_v60 }
0x1131   :  { %3438 = vpow2.f32 %v2683_v0 }
0x113a   :  { %v3437_v63 = vpop.eup %3436 }
0x113b   :  { %1286 = vrot.lane.b32.xlu0 %v3437_v63, %s3529_s3  ;;  %v3439_v1 = vpop.eup %3438 }
0x113c   :  { %v1267_v2 = vadd.f32 1.0, %v3439_v1 }
0x113e   :  { %3440 = vrcp.f32 %v1267_v2 }
0x1148   :  { %v3441_v4 = vpop.eup %3440 }
0x11ad   :  { %v1287_v5 = vpop.permute.xlu0 %1286 }
0x11ae   :  { %v4024_v6 = vmul.f32 %v3441_v4, %v1287_v5 }
0x11b0   :  { %2684 = vmatmul.mubr.msk.f32.vlgmr.msra.gmra.mrb[6].mxu1 %vm535_vm9, %v4024_v6  ;;  %v1400_v54 = vsel %vm1398_vm10, %v3919_v59, %v4024_v6  ;;  %v1405_v36 = vsel %vm1398_vm10, %v4024_v6, %v3919_v59 }
0x1283   :  { %v1361_v7 = vpop.f32.mrb[6].mxu1 }
0x1284   :  { %v1363_v52 = vpop.f32.mrb[7].mxu1  ;;  %v3322_v8 = vadd.f32 %v3984_v3, %v1361_v7  ;;  %v1409_v3 = vld [vmem:[%s4314_s7 + $0x10] sm:$0xff] }
0x1285   :  { %v3324_v57 = vadd.f32 %v3978_v62, %v1363_v52  ;;  %v1407_v62 = vld [vmem:[%s4314_s7] sm:$0xff]  ;;  %v3197_v18 = vpack.c.bf16 %v1410_v16, %v1409_v3 }
0x1286   :  { %v2685_v42 = vmul.f32 -1.442695, %v3322_v8  ;;  %v3193_v13 = vpack.c.bf16 %v1408_v12, %v1407_v62 }
0x1287   :  { %3442 = vtanh.f32 %v3324_v57  ;;  %v2686_v37 = vmul.f32 -1.442695, %v3324_v57 }
0x1288   :  { %3444 = vpow2.f32 %v2685_v42  ;;  %3194 = vmatprep.subr.bf16.mxu0 %v3193_v13 }
0x1289   :  { %3196 = vmatpush3.bf16.msra.mxu0 %v3193_v13 }
0x128a   :  { %3198 = vmatprep.subr.bf16.mxu0 %v3197_v18 }
0x128d   :  { %3200 = vmatpush3.bf16.msra.mxu0 %v3197_v18 }
0x128e   :  { %3202 = vmatprep.subr.bf16.mxu0 %v3201_v24 }
0x1291   :  { %v3443_v41 = vpop.eup %3442  ;;  %3204 = vmatpush3.bf16.msra.mxu0 %v3201_v24 }
0x1292   :  { %1383 = vrot.lane.b32.xlu1 %v3443_v41, %s3529_s3  ;;  %v3445_v9 = vpop.eup %3444  ;;  %3206 = vmatprep.subr.bf16.mxu0 %v3205_v29 }
0x1293   :  { %v1374_v10 = vadd.f32 1.0, %v3445_v9 }
0x1295   :  { %3446 = vrcp.f32 %v1374_v10  ;;  %3208 = vmatpush3.bf16.msra.mxu0 %v3205_v29 }
0x1296   :  { %3209 = vmatprep.subr.bf16.mxu0 %v3530_v14 }
0x129f   :  { %v3447_v51 = vpop.eup %3446 }
0x12a0   :  { %v1381_v30 = vmul.f32 %v3447_v51, %v1283_v60 }
0x1304   :  { %v1384_v55 = vpop.permute.xlu1 %1383 }
0x1305   :  { %v1386_v11 = vmul.f32 %v3447_v51, %v1384_v55 }
0x1307   :  { %1388 = vrot.lane.b32.xlu0 %v1386_v11, %s3529_s3 }
0x1379   :  { %v1389_v31 = vpop.permute.xlu0 %1388 }
0x137a   :  { %v1391_v34 = vadd.f32 %v1389_v31, %v1381_v30 }
0x137c   :  { %3448 = vtanh.f32 %v1391_v34 }
0x137d   :  { %3450 = vpow2.f32 %v2686_v37 }
0x1386   :  { %v3449_v35 = vpop.eup %3448 }
0x1387   :  { %1394 = vrot.lane.b32.xlu1 %v3449_v35, %s3529_s3  ;;  %v3451_v38 = vpop.eup %3450 }
0x1388   :  { %v1375_v39 = vadd.f32 1.0, %v3451_v38 }
0x138a   :  { %3452 = vrcp.f32 %v1375_v39 }
0x1394   :  { %v3453_v44 = vpop.eup %3452 }
0x13f9   :  { %v1395_v47 = vpop.permute.xlu1 %1394 }
0x13fa   :  { %v1397_v49 = vmul.f32 %v3453_v44, %v1395_v47 }
0x13fc   :  { %v1399_v53 = vsel %vm1398_vm10, %v3897_v17, %v1397_v49  ;;  %v4116_v61 = vsel %vm1398_vm10, %v1397_v49, %v3897_v17 }
0x13fd   :  { %2876 = vmatprep.mubr.msk.f32.mxu0 %vm535_vm9, %v1399_v53 }
0x13fe   :  { %2877 = vmatmul.mubr.msk.f32.vlgmr.msra.gmra.mrb[16].mxu0 %vm535_vm9, %v1400_v54 }
0x13ff   :  { %3211 = vmatpush3.bf16.msra.mxu0 %v4065_v50  ;;  %2879 = vmatprep.mubr.msk.f32.mxu0 %vm535_vm9, %v1401_v26 }
0x1400   :  { %3212 = vmatprep.subr.bf16.mxu0 %v3530_v14 }
0x1402   :  { %2880 = vmatmul.mubr.msk.f32.gmra.mrb[18].mxu0 %vm535_vm9, %v1402_v32 }
0x1403   :  { %2882 = vmatprep.mubr.msk.f32.mxu0 %vm535_vm9, %v1403_v45  ;;  %3214 = vmatpush3.bf16.msra.mxu0 %v4088_v27 }
0x1404   :  { %3215 = vmatprep.subr.bf16.mxu0 %v3530_v14 }
0x1406   :  { %2883 = vmatmul.mubr.msk.f32.gmra.mrb[20].mxu0 %vm535_vm9, %v1404_v33 }
0x1407   :  { %2885 = vmatprep.mubr.msk.f32.mxu0 %vm535_vm9, %v1405_v36 }
0x140a   :  { %2886 = vmatmul.mubr.msk.f32.gmra.mrb[22].mxu0 %vm535_vm9, %v4116_v61 }
0x140b   :  { %2896 = vmatprep.mubr.msk.f32.mxu0 %vm3531_vm11, %v3528_v56 }
0x140e   :  { %2897 = vmatmul.mubr.f32.vlgmr.msra.gmra.mrb[24].mxu0 %v3528_v56 }
0x140f   :  { %3217 = vmatpush3.bf16.msra.mxu0 %v4065_v50  ;;  %2907 = vmatprep.mubr.msk.f32.mxu0 %vm3531_vm11, %v3528_v56 }
0x1410   :  { %3218 = vmatprep.subr.bf16.mxu0 %v3530_v14 }
0x1413   :  { %3220 = vmatpush3.bf16.msra.mxu0 %v4088_v27 }
0x1414   :  { %3221 = vmatprep.subr.bf16.mxu0 %v3530_v14 }
0x14d1   :  { %v2878_v17 = vpop.f32.mrb[16].mxu0 }
0x14d2   :  { %v1518_v59 = vadd.f32 %v2878_v17, %v2687_v46  ;;  %v1512_v22 = vpop.f32.mrb[17].mxu0 }
0x14d3   :  { %v1513_v52 = vadd.f32 %v2687_v46, %v1512_v22 }
0x14d5   :  { %v2881_v15 = vpop.f32.mrb[18].mxu0 }
0x14d6   :  { %v4132_v48 = vadd.f32 %v2881_v15, %v2687_v46  ;;  %v1522_v58 = vpop.f32.mrb[19].mxu0 }
0x14d7   :  { %v4134_v60 = vadd.f32 %v2687_v46, %v1522_v58 }
0x14d9   :  { %v2884_v63 = vpop.f32.mrb[20].mxu0 }
0x14da   :  { %v4136_v0 = vadd.f32 %v2884_v63, %v2687_v46  ;;  %v1532_v1 = vpop.f32.mrb[21].mxu0 }
0x14db   :  { %v4138_v2 = vadd.f32 %v2687_v46, %v1532_v1 }
0x14dd   :  { %v2887_v4 = vpop.f32.mrb[22].mxu0 }
0x14de   :  { %v4140_v5 = vadd.f32 %v2887_v4, %v2687_v46  ;;  %v1542_v6 = vpop.f32.mrb[23].mxu0 }
0x14df   :  { %v4142_v7 = vadd.f32 %v2687_v46, %v1542_v6 }
0x14e1   :  { %v1623_v57 = vpop.f32.mrb[24].mxu0 }
0x14e2   :  { %v1627_v41 = vadd.f32 %v1623_v57, %v1513_v52  ;;  %v2898_v8 = vpop.f32.mrb[25].mxu0 }
0x14e4   :  { %3454 = vtanh.f32 %v1627_v41  ;;  %v2696_v9 = vmul.f32 -1.442695, %v1627_v41 }
0x14e6   :  { %3456 = vpow2.f32 %v2696_v9 }
0x14ee   :  { %v3455_v42 = vpop.eup %3454 }
0x14ef   :  { %1637 = vrot.lane.b32.xlu0 %v3455_v42, %s3532_s9 }
0x14f0   :  { %v3457_v10 = vpop.eup %3456 }
0x14f1   :  { %v1631_v51 = vadd.f32 1.0, %v3457_v10 }
0x14f3   :  { %3458 = vrcp.f32 %v1631_v51 }
0x14fd   :  { %v3459_v55 = vpop.eup %3458 }
0x14fe   :  { %v1635_v12 = vmul.f32 0.0, %v3459_v55 }
0x1561   :  { %v1638_v11 = vpop.permute.xlu0 %1637 }
0x1562   :  { %v1640_v62 = vmul.f32 %v3459_v55, %v1638_v11 }
0x1564   :  { %1642 = vrot.lane.b32.xlu1 %v1640_v62, %s3532_s9 }
0x15d6   :  { %v1643_v3 = vpop.permute.xlu1 %1642 }
0x15d7   :  { %v1645_v13 = vadd.f32 %v1643_v3, %v1635_v12 }
0x15d9   :  { %3460 = vtanh.f32 %v1645_v13 }
0x15e3   :  { %v3461_v16 = vpop.eup %3460 }
0x15e4   :  { %1648 = vrot.lane.b32.xlu0 %v3461_v16, %s3532_s9 }
0x1656   :  { %v1649_v18 = vpop.permute.xlu0 %1648 }
0x1657   :  { %v1651_v19 = vmul.f32 %v3459_v55, %v1649_v18 }
0x1659   :  { %1653 = vrot.lane.b32.xlu1 %v1651_v19, %s3529_s3 }
0x16cb   :  { %v1654_v23 = vpop.permute.xlu1 %1653 }
0x16cc   :  { %2908 = vmatmul.mubr.msk.f32.vlgmr.msra.gmra.mrb[26].mxu0 %vm246_vm8, %v1654_v23 }
0x16cd   :  { %3223 = vmatpush3.bf16.msra.mxu0 %v4065_v50  ;;  %2918 = vmatprep.mubr.msk.f32.mxu0 %vm3531_vm11, %v3528_v56 }
0x16ce   :  { %3224 = vmatprep.subr.bf16.mxu0 %v3530_v14 }
0x16d1   :  { %3226 = vmatpush3.bf16.msra.mxu0 %v4088_v27 }
0x16d2   :  { %3227 = vmatprep.subr.bf16.mxu0 %v3530_v14 }
0x179f   :  { %v1723_v24 = vpop.f32.mrb[26].mxu0 }
0x17a0   :  { %v1727_v25 = vadd.f32 %v1723_v24, %v1518_v59  ;;  %v2909_v28 = vpop.f32.mrb[27].mxu0 }
0x17a2   :  { %3462 = vtanh.f32 %v1727_v25  ;;  %v2698_v30 = vmul.f32 -1.442695, %v1727_v25 }
0x17a4   :  { %3464 = vpow2.f32 %v2698_v30 }
0x17ac   :  { %v3463_v29 = vpop.eup %3462 }
0x17ad   :  { %1737 = vrot.lane.b32.xlu0 %v3463_v29, %s3532_s9 }
0x17ae   :  { %v3465_v31 = vpop.eup %3464 }
0x17af   :  { %v1731_v34 = vadd.f32 1.0, %v3465_v31 }
0x17b1   :  { %3466 = vrcp.f32 %v1731_v34 }
0x17bb   :  { %v3467_v35 = vpop.eup %3466 }
0x17bc   :  { %v1735_v39 = vmul.f32 %v3467_v35, %v1645_v13 }
0x181f   :  { %v1738_v37 = vpop.permute.xlu0 %1737 }
0x1820   :  { %v1740_v38 = vmul.f32 %v3467_v35, %v1738_v37 }
0x1822   :  { %1742 = vrot.lane.b32.xlu1 %v1740_v38, %s3532_s9 }
0x1894   :  { %v1743_v43 = vpop.permute.xlu1 %1742 }
0x1895   :  { %v1745_v40 = vadd.f32 %v1743_v43, %v1735_v39 }
0x1897   :  { %3468 = vtanh.f32 %v1745_v40 }
0x18a1   :  { %v3469_v44 = vpop.eup %3468 }
0x18a2   :  { %1748 = vrot.lane.b32.xlu0 %v3469_v44, %s3532_s9 }
0x1914   :  { %v1749_v47 = vpop.permute.xlu0 %1748 }
0x1915   :  { %v1751_v49 = vmul.f32 %v3467_v35, %v1749_v47 }
0x1917   :  { %1753 = vrot.lane.b32.xlu1 %v1751_v49, %s3529_s3 }
0x1989   :  { %v1754_v53 = vpop.permute.xlu1 %1753 }
0x198a   :  { %2919 = vmatmul.mubr.msk.f32.vlgmr.msra.gmra.mrb[28].mxu0 %vm246_vm8, %v1754_v53 }
0x198b   :  { %3229 = vmatpush3.bf16.msra.mxu0 %v4065_v50  ;;  %2929 = vmatprep.mubr.msk.f32.mxu0 %vm3531_vm11, %v3528_v56 }
0x198c   :  { %3230 = vmatprep.subr.bf16.mxu0 %v3530_v14 }
0x198f   :  { %3232 = vmatpush3.bf16.msra.mxu0 %v4088_v27 }
0x1990   :  { %3233 = vmatprep.subr.bf16.mxu0 %v3530_v14 }
0x1a5d   :  { %v1823_v20 = vpop.f32.mrb[28].mxu0 }
0x1a5e   :  { %v1827_v21 = vadd.f32 %v1823_v20, %v4134_v60  ;;  %v2920_v54 = vpop.f32.mrb[29].mxu0 }
0x1a60   :  { %3470 = vtanh.f32 %v1827_v21  ;;  %v2700_v32 = vmul.f32 -1.442695, %v1827_v21 }
0x1a62   :  { %3472 = vpow2.f32 %v2700_v32 }
0x1a6a   :  { %v3471_v26 = vpop.eup %3470 }
0x1a6b   :  { %1837 = vrot.lane.b32.xlu0 %v3471_v26, %s3532_s9 }
0x1a6c   :  { %v3473_v45 = vpop.eup %3472 }
0x1a6d   :  { %v1831_v33 = vadd.f32 1.0, %v3473_v45 }
0x1a6f   :  { %3474 = vrcp.f32 %v1831_v33 }
0x1a79   :  { %v3475_v36 = vpop.eup %3474 }
0x1a7a   :  { %v1835_v59 = vmul.f32 %v3475_v36, %v1745_v40 }
0x1add   :  { %v1838_v46 = vpop.permute.xlu0 %1837 }
0x1ade   :  { %v1840_v17 = vmul.f32 %v3475_v36, %v1838_v46 }
0x1ae0   :  { %1842 = vrot.lane.b32.xlu1 %v1840_v17, %s3532_s9 }
0x1b52   :  { %v1843_v22 = vpop.permute.xlu1 %1842 }
0x1b53   :  { %v1845_v15 = vadd.f32 %v1843_v22, %v1835_v59 }
0x1b55   :  { %3476 = vtanh.f32 %v1845_v15 }
0x1b5f   :  { %v3477_v58 = vpop.eup %3476 }
0x1b60   :  { %1848 = vrot.lane.b32.xlu0 %v3477_v58, %s3532_s9 }
0x1bd2   :  { %v1849_v60 = vpop.permute.xlu0 %1848 }
0x1bd3   :  { %v1851_v63 = vmul.f32 %v3475_v36, %v1849_v60 }
0x1bd5   :  { %1853 = vrot.lane.b32.xlu1 %v1851_v63, %s3529_s3 }
0x1c47   :  { %v1854_v1 = vpop.permute.xlu1 %1853 }
0x1c48   :  { %2930 = vmatmul.mubr.msk.f32.vlgmr.msra.gmra.mrb[30].mxu0 %vm246_vm8, %v1854_v1 }
0x1c49   :  { %3235 = vmatpush3.bf16.msra.mxu0 %v4065_v50  ;;  %2940 = vmatprep.mubr.msk.f32.mxu0 %vm3531_vm11, %v3528_v56 }
0x1c4a   :  { %3236 = vmatprep.subr.bf16.mxu0 %v3530_v14 }
0x1c4d   :  { %3238 = vmatpush3.bf16.msra.mxu0 %v4088_v27 }
0x1c4e   :  { %3239 = vmatprep.subr.bf16.mxu0 %v3530_v14 }
0x1d1b   :  { %v1923_v4 = vpop.f32.mrb[30].mxu0 }
0x1d1c   :  { %v1927_v6 = vadd.f32 %v1923_v4, %v4132_v48  ;;  %v2931_v52 = vpop.f32.mrb[31].mxu0 }
0x1d1e   :  { %3478 = vtanh.f32 %v1927_v6  ;;  %v2702_v41 = vmul.f32 -1.442695, %v1927_v6 }
0x1d20   :  { %3480 = vpow2.f32 %v2702_v41 }
0x1d28   :  { %v3479_v57 = vpop.eup %3478 }
0x1d29   :  { %1937 = vrot.lane.b32.xlu0 %v3479_v57, %s3532_s9 }
0x1d2a   :  { %v3481_v8 = vpop.eup %3480 }
0x1d2b   :  { %v1931_v42 = vadd.f32 1.0, %v3481_v8 }
0x1d2d   :  { %3482 = vrcp.f32 %v1931_v42 }
0x1d37   :  { %v3483_v9 = vpop.eup %3482 }
0x1d38   :  { %v1935_v55 = vmul.f32 %v3483_v9, %v1845_v15 }
0x1d9b   :  { %v1938_v10 = vpop.permute.xlu0 %1937 }
0x1d9c   :  { %v1940_v51 = vmul.f32 %v3483_v9, %v1938_v10  ;;  %v2353_v10 = vld [vmem:[%s4317_s10 + $0x8] sm:$0xff] }
0x1d9e   :  { %1942 = vrot.lane.b32.xlu1 %v1940_v51, %s3532_s9 }
0x1e10   :  { %v1943_v11 = vpop.permute.xlu1 %1942 }
0x1e11   :  { %v1945_v62 = vadd.f32 %v1943_v11, %v1935_v55  ;;  %v2354_v55 = vld [vmem:[%s4317_s10 + $0x10] sm:$0xff]  ;;  %v2355_v11 = vld [vmem:[%s4317_s10 + $0x18] sm:$0xff] }
0x1e13   :  { %3484 = vtanh.f32 %v1945_v62 }
0x1e1d   :  { %v3485_v48 = vpop.eup %3484 }
0x1e1e   :  { %1948 = vrot.lane.b32.xlu0 %v3485_v48, %s3532_s9  ;;  %v3261_v48 = vpack.c.bf16 %v2355_v11, %v2354_v55 }
0x1e90   :  { %v1949_v12 = vpop.permute.xlu0 %1948 }
0x1e91   :  { %v1951_v3 = vmul.f32 %v3483_v9, %v1949_v12  ;;  %v2352_v9 = vld [vmem:[%s4317_s10] sm:$0xff] }
0x1e92   :  { %v3258_v51 = vpack.c.bf16 %v2353_v10, %v2352_v9  ;;  %v2356_v12 = vld [vmem:[%s4317_s10 + $0x20] sm:$0xff] }
0x1e93   :  { %1953 = vrot.lane.b32.xlu1 %v1951_v3, %s3529_s3  ;;  %v2357_v3 = vld [vmem:[%s4317_s10 + $0x28] sm:$0xff]  ;;  %v2716_v10 = vld [vmem:[%s4320_s13] ss:$0 sm:$0xff] }
0x1f05   :  { %v1954_v13 = vpop.permute.xlu1 %1953 }
0x1f06   :  { %2941 = vmatmul.mubr.msk.f32.vlgmr.msra.gmra.mrb[32].mxu0 %vm246_vm8, %v1954_v13  ;;  %v3264_v13 = vpack.c.bf16 %v2357_v3, %v2356_v12 }
0x1f07   :  { %3241 = vmatpush3.bf16.msra.mxu0 %v4065_v50  ;;  %2951 = vmatprep.mubr.msk.f32.mxu0 %vm3531_vm11, %v3528_v56 }
0x1f08   :  { %3242 = vmatprep.subr.bf16.mxu0 %v3530_v14 }
0x1f0b   :  { %3244 = vmatpush3.bf16.msra.mxu0 %v4088_v27 }
0x1f0c   :  { %3245 = vmatprep.subr.bf16.mxu0 %v3530_v14 }
0x1fd9   :  { %v2023_v16 = vpop.f32.mrb[32].mxu0 }
0x1fda   :  { %v2027_v18 = vadd.f32 %v2023_v16, %v4138_v2  ;;  %v2942_v19 = vpop.f32.mrb[33].mxu0  ;;  %v2358_v16 = vld [vmem:[%s4317_s10 + $0x30] sm:$0xff] }
0x1fdc   :  { %3486 = vtanh.f32 %v2027_v18  ;;  %v2704_v24 = vmul.f32 -1.442695, %v2027_v18  ;;  %v2359_v18 = vld [vmem:[%s4317_s10 + $0x38] sm:$0xff] }
0x1fdd   :  { %v3267_v19 = vpack.c.bf16 %v2359_v18, %v2358_v16 }
0x1fde   :  { %3488 = vpow2.f32 %v2704_v24 }
0x1fe6   :  { %v3487_v23 = vpop.eup %3486 }
0x1fe7   :  { %2037 = vrot.lane.b32.xlu0 %v3487_v23, %s3532_s9 }
0x1fe8   :  { %v3489_v25 = vpop.eup %3488 }
0x1fe9   :  { %v2031_v28 = vadd.f32 1.0, %v3489_v25 }
0x1feb   :  { %3490 = vrcp.f32 %v2031_v28 }
0x1ff5   :  { %v3491_v29 = vpop.eup %3490 }
0x1ff6   :  { %v2035_v34 = vmul.f32 %v3491_v29, %v1945_v62 }
0x2059   :  { %v2038_v30 = vpop.permute.xlu0 %2037 }
0x205a   :  { %v2040_v31 = vmul.f32 %v3491_v29, %v2038_v30 }
0x205c   :  { %2042 = vrot.lane.b32.xlu1 %v2040_v31, %s3532_s9 }
0x20ce   :  { %v2043_v35 = vpop.permute.xlu1 %2042 }
0x20cf   :  { %v2045_v37 = vadd.f32 %v2043_v35, %v2035_v34 }
0x20d1   :  { %3492 = vtanh.f32 %v2045_v37 }
0x20db   :  { %v3493_v2 = vpop.eup %3492 }
0x20dc   :  { %2048 = vrot.lane.b32.xlu0 %v3493_v2, %s3532_s9 }
0x214e   :  { %v2049_v38 = vpop.permute.xlu0 %2048 }
0x214f   :  { %v2051_v39 = vmul.f32 %v3491_v29, %v2049_v38  ;;  %v2711_v29 = vld [vmem:[%s4318_s11] ss:$0 sm:$0xff] }
0x2151   :  { %2053 = vrot.lane.b32.xlu1 %v2051_v39, %s3529_s3 }
0x21c3   :  { %v2054_v43 = vpop.permute.xlu1 %2053 }
0x21c4   :  { %2952 = vmatmul.mubr.msk.f32.vlgmr.msra.gmra.mrb[34].mxu0 %vm246_vm8, %v2054_v43 }
0x21c5   :  { %3247 = vmatpush3.bf16.msra.mxu0 %v4065_v50  ;;  %2962 = vmatprep.mubr.msk.f32.mxu0 %vm3531_vm11, %v3528_v56 }
0x21c6   :  { %3248 = vmatprep.subr.bf16.mxu0 %v3530_v14 }
0x21c9   :  { %3250 = vmatpush3.bf16.msra.mxu0 %v4088_v27 }
0x21ca   :  { %3251 = vmatprep.subr.bf16.mxu0 %v3530_v14 }
0x2297   :  { %v2123_v40 = vpop.f32.mrb[34].mxu0 }
0x2298   :  { %v2127_v44 = vadd.f32 %v2123_v40, %v4136_v0  ;;  %v2953_v47 = vpop.f32.mrb[35].mxu0 }
0x229a   :  { %3494 = vtanh.f32 %v2127_v44  ;;  %v2706_v53 = vmul.f32 -1.442695, %v2127_v44 }
0x229c   :  { %3496 = vpow2.f32 %v2706_v53 }
0x22a4   :  { %v3495_v49 = vpop.eup %3494 }
0x22a5   :  { %2137 = vrot.lane.b32.xlu0 %v3495_v49, %s3532_s9 }
0x22a6   :  { %v3497_v20 = vpop.eup %3496 }
0x22a7   :  { %v2131_v21 = vadd.f32 1.0, %v3497_v20 }
0x22a9   :  { %3498 = vrcp.f32 %v2131_v21 }
0x22b3   :  { %v3499_v54 = vpop.eup %3498 }
0x22b4   :  { %v2135_v45 = vmul.f32 %v3499_v54, %v2045_v37 }
0x2317   :  { %v2138_v26 = vpop.permute.xlu0 %2137 }
0x2318   :  { %v2140_v32 = vmul.f32 %v3499_v54, %v2138_v26 }
0x231a   :  { %2142 = vrot.lane.b32.xlu1 %v2140_v32, %s3532_s9 }
0x238c   :  { %v2143_v33 = vpop.permute.xlu1 %2142 }
0x238d   :  { %v2145_v36 = vadd.f32 %v2143_v33, %v2135_v45 }
0x238f   :  { %3500 = vtanh.f32 %v2145_v36 }
0x2399   :  { %v3501_v0 = vpop.eup %3500 }
0x239a   :  { %2148 = vrot.lane.b32.xlu0 %v3501_v0, %s3532_s9  ;;  %v2465_v0 = vld [vmem:[%s4319_s12 + $0x20] sm:$0xff] }
0x240c   :  { %v2149_v46 = vpop.permute.xlu0 %2148 }
0x240d   :  { %v2151_v17 = vmul.f32 %v3499_v54, %v2149_v46  ;;  %v2466_v46 = vld [vmem:[%s4319_s12 + $0x28] sm:$0xff] }
0x240f   :  { %2153 = vrot.lane.b32.xlu1 %v2151_v17, %s3529_s3  ;;  %v2467_v17 = vld [vmem:[%s4319_s12 + $0x30] sm:$0xff] }
0x2481   :  { %v2154_v59 = vpop.permute.xlu1 %2153 }
0x2482   :  { %2963 = vmatmul.mubr.msk.f32.vlgmr.msra.gmra.mrb[36].mxu0 %vm246_vm8, %v2154_v59  ;;  %v3270_v59 = vpack.c.bf16 %v2466_v46, %v2465_v0 }
0x2483   :  { %3253 = vmatpush3.bf16.msra.mxu0 %v4065_v50  ;;  %2973 = vmatprep.mubr.msk.f32.mxu0 %vm3531_vm11, %v3528_v56 }
0x2484   :  { %3254 = vmatprep.subr.bf16.mxu0 %v3530_v14 }
0x2487   :  { %3256 = vmatpush3.bf16.msra.mxu0 %v4088_v27 }
0x2488   :  { %3257 = vmatprep.subr.bf16.mxu0 %v3530_v14 }
0x2555   :  { %v2223_v22 = vpop.f32.mrb[36].mxu0 }
0x2556   :  { %v2227_v15 = vadd.f32 %v2223_v22, %v4142_v7  ;;  %v2964_v58 = vpop.f32.mrb[37].mxu0  ;;  %v2468_v22 = vld [vmem:[%s4319_s12 + $0x38] sm:$0xff] }
0x2558   :  { %3502 = vtanh.f32 %v2227_v15  ;;  %v2708_v63 = vmul.f32 -1.442695, %v2227_v15  ;;  %v3273_v15 = vpack.c.bf16 %v2468_v22, %v2467_v17 }
0x255a   :  { %3504 = vpow2.f32 %v2708_v63 }
0x2562   :  { %v3503_v60 = vpop.eup %3502 }
0x2563   :  { %2237 = vrot.lane.b32.xlu0 %v3503_v60, %s3532_s9 }
0x2564   :  { %v3505_v50 = vpop.eup %3504 }
0x2565   :  { %v2231_v1 = vadd.f32 1.0, %v3505_v50 }
0x2567   :  { %3506 = vrcp.f32 %v2231_v1  ;;  %v2461_v1 = vld [vmem:[%s4319_s12] sm:$0xff] }
0x2571   :  { %v3507_v4 = vpop.eup %3506 }
0x2572   :  { %v2235_v27 = vmul.f32 %v3507_v4, %v2145_v36 }
0x25d5   :  { %v2238_v6 = vpop.permute.xlu0 %2237 }
0x25d6   :  { %v2240_v52 = vmul.f32 %v3507_v4, %v2238_v6 }
0x25d8   :  { %2242 = vrot.lane.b32.xlu1 %v2240_v52, %s3532_s9  ;;  %v2463_v52 = vld [vmem:[%s4319_s12 + $0x10] sm:$0xff] }
0x264a   :  { %v2243_v57 = vpop.permute.xlu1 %2242 }
0x264b   :  { %v4217_v41 = vadd.f32 %v2243_v57, %v2235_v27  ;;  %v2464_v27 = vld [vmem:[%s4319_s12 + $0x18] sm:$0xff] }
0x264d   :  { %3508 = vtanh.f32 %v4217_v41 }
0x2657   :  { %v3509_v7 = vpop.eup %3508 }
0x2658   :  { %2248 = vrot.lane.b32.xlu0 %v3509_v7, %s3532_s9 }
0x26ca   :  { %v2249_v8 = vpop.permute.xlu0 %2248 }
0x26cb   :  { %v2251_v42 = vmul.f32 %v3507_v4, %v2249_v8  ;;  %v2462_v4 = vld [vmem:[%s4319_s12 + $0x8] sm:$0xff] }
0x26cc   :  { %v3276_v6 = vpack.c.bf16 %v2462_v4, %v2461_v1 }
0x26cd   :  { %2253 = vrot.lane.b32.xlu1 %v2251_v42, %s3529_s3 }
0x273f   :  { %v2254_v62 = vpop.permute.xlu1 %2253 }
0x2740   :  { %2974 = vmatmul.mubr.msk.f32.vlgmr.msra.gmra.mrb[38].mxu0 %vm246_vm8, %v2254_v62 }
0x2741   :  { %3259 = vmatpush3.bf16.msra.mxu0 %v3258_v51  ;;  %2992 = vmatprep.mubr.msk.f32.mxu0 %vm3531_vm11, %v3528_v56 }
0x2742   :  { %3260 = vmatprep.subr.bf16.mxu0 %v3530_v14 }
0x2745   :  { %3262 = vmatpush3.bf16.msra.mxu0 %v3261_v48 }
0x2746   :  { %3263 = vmatprep.subr.bf16.mxu0 %v3530_v14 }
0x2749   :  { %3265 = vmatpush3.bf16.msra.mxu0 %v3264_v13 }
0x274a   :  { %3266 = vmatprep.subr.bf16.mxu0 %v3530_v14 }
0x274d   :  { %3268 = vmatpush3.bf16.msra.mxu0 %v3267_v19 }
0x274e   :  { %3269 = vmatprep.subr.bf16.mxu0 %v3530_v14 }
0x2750   :  { %2993 = vmatmul.mubr.msk.f32.vlgmr.msra.gmra.mrb[40].mxu0 %vm535_vm9, %v4116_v61 }
0x2751   :  { %3003 = vmatprep.mubr.msk.f32.mxu0 %vm3531_vm11, %v3528_v56  ;;  %3271 = vmatpush3.bf16.msra.mxu0 %v3270_v59 }
0x2752   :  { %3272 = vmatprep.subr.bf16.mxu0 %v3530_v14 }
0x2755   :  { %3274 = vmatpush3.bf16.msra.mxu0 %v3273_v15 }
0x2756   :  { %3275 = vmatprep.subr.bf16.mxu0 %v3530_v14 }
0x2813   :  { %v2323_v23 = vpop.f32.mrb[38].mxu0 }
0x2814   :  { %v2327_v24 = vadd.f32 %v2323_v23, %v4140_v5  ;;  %v2975_v25 = vpop.f32.mrb[39].mxu0 }
0x2816   :  { %3510 = vtanh.f32 %v2327_v24  ;;  %v2710_v35 = vmul.f32 -1.442695, %v2327_v24 }
0x2820   :  { %v3511_v28 = vpop.eup %3510 }
0x2821   :  { %2337 = vrot.lane.b32.xlu1 %v3511_v28, %s3532_s9 }
0x2823   :  { %v2433_v30 = vpop.f32.mrb[40].mxu0 }
0x2824   :  { %v2434_v31 = vadd.f32 %v2711_v29, %v2433_v30  ;;  %v2994_v34 = vpop.f32.mrb[41].mxu0 }
0x2826   :  { %3512 = vtanh.f32 %v2434_v31  ;;  %v2713_v5 = vmul.f32 -1.442695, %v2434_v31 }
0x2827   :  { %3514 = vpow2.f32 %v2710_v35 }
0x2828   :  { %3516 = vpow2.f32 %v2713_v5 }
0x2830   :  { %v3513_v61 = vpop.eup %3512 }
0x2831   :  { %2446 = vrot.lane.b32.xlu0 %v3513_v61, %s3532_s9  ;;  %v3515_v37 = vpop.eup %3514 }
0x2832   :  { %v2331_v2 = vadd.f32 1.0, %v3515_v37  ;;  %v3517_v38 = vpop.eup %3516 }
0x2833   :  { %v2440_v44 = vadd.f32 1.0, %v3517_v38 }
0x2834   :  { %3518 = vrcp.f32 %v2331_v2 }
0x2835   :  { %3520 = vrcp.f32 %v2440_v44 }
0x283e   :  { %v3519_v39 = vpop.eup %3518 }
0x283f   :  { %v3521_v47 = vpop.eup %3520  ;;  %v2335_v20 = vmul.f32 %v3519_v39, %v4217_v41  ;;  %v3279_v41 = vpack.c.bf16 %v2464_v27, %v2463_v52 }
0x2840   :  { %v2444_v32 = vmul.f32 0.0, %v3521_v47 }
0x2893   :  { %v2338_v43 = vpop.permute.xlu1 %2337 }
0x2894   :  { %v2340_v40 = vmul.f32 %v3519_v39, %v2338_v43 }
0x2896   :  { %2342 = vrot.lane.b32.xlu1 %v2340_v40, %s3532_s9 }
0x28a3   :  { %v2447_v49 = vpop.permute.xlu0 %2446 }
0x28a4   :  { %v2449_v53 = vmul.f32 %v3521_v47, %v2447_v49 }
0x28a6   :  { %2451 = vrot.lane.b32.xlu0 %v2449_v53, %s3532_s9 }
0x2908   :  { %v2343_v21 = vpop.permute.xlu1 %2342 }
0x2909   :  { %v2345_v54 = vadd.f32 %v2343_v21, %v2335_v20 }
0x290b   :  { %3522 = vtanh.f32 %v2345_v54 }
0x2915   :  { %v3523_v26 = vpop.eup %3522 }
0x2916   :  { %2348 = vrot.lane.b32.xlu1 %v3523_v26, %s3532_s9 }
0x2918   :  { %v2452_v45 = vpop.permute.xlu0 %2451 }
0x2919   :  { %v2454_v33 = vadd.f32 %v2452_v45, %v2444_v32 }
0x291b   :  { %3524 = vtanh.f32 %v2454_v33 }
0x2925   :  { %v3525_v36 = vpop.eup %3524 }
0x2926   :  { %2457 = vrot.lane.b32.xlu0 %v3525_v36, %s3532_s9 }
0x2988   :  { %v2349_v58 = vpop.permute.xlu1 %2348 }
0x2989   :  { %v2351_v60 = vmul.f32 %v3519_v39, %v2349_v58 }
0x298b   :  { %2545 = vrot.lane.b32.xlu1 %v2351_v60, %s3529_s3 }
0x2998   :  { %v2458_v63 = vpop.permute.xlu0 %2457 }
0x2999   :  { %v2460_v50 = vmul.f32 %v3521_v47, %v2458_v63 }
0x299b   :  { %2470 = vrot.lane.b32.xlu0 %v2460_v50, %s3529_s3 }
0x29fd   :  { %v2546_v7 = vpop.permute.xlu1 %2545 }
0x2a0d   :  { %v2471_v57 = vpop.permute.xlu0 %2470 }
0x2a0e   :  { %3004 = vmatmul.mubr.msk.f32.vlgmr.msra.gmra.mrb[42].mxu0 %vm246_vm8, %v2471_v57 }
0x2a0f   :  { %3277 = vmatpush3.bf16.msra.mxu0 %v3276_v6  ;;  %3014 = vmatprep.mubr.msk.f32.mxu0 %vm3531_vm11, %v3528_v56 }
0x2a10   :  { %3278 = vmatprep.subr.bf16.mxu0 %v3530_v14 }
0x2a13   :  { %3280 = vmatpush3.bf16.msra.mxu0 %v3279_v41 }
0x2a16   :  { %3015 = vmatmul.mubr.msk.f32.vlgmr.msra.gmra.mrb[44].mxu0 %vm246_vm8, %v2546_v7 }
0x2ae1   :  { %v2540_v8 = vpop.f32.mrb[42].mxu0 }
0x2ae2   :  { %v3005_v42 = vpop.f32.mrb[43].mxu0 }
0x2ae9   :  { %v2615_v9 = vpop.f32.mrb[44].mxu0 }
0x2aea   :  { %v2616_v51 = vadd.f32 %v2615_v9, %v2540_v8  ;;  %v3016_v55 = vpop.f32.mrb[45].mxu0 }
0x2aec   :  { %v2626_v11 = vadd.f32 %v2716_v10, %v2616_v51 }
0x2aee   :  { %2627 = vst [vmem:[%s4321_s14] sm:$0xff] %v2626_v11 }

</bundles_post_ra>
